<compile_context>
chip_gen: v6e
topology: v6e:2x2x1
jax: 0.10.0
libtpu: 0.0.40
codegen_flags: <defaults>
</compile_context>

<pallas_src>
import functools

import jax
import jax.numpy as jnp
from jax.experimental import pallas as pl
from jax.experimental.pallas import tpu as pltpu

TN_MAX = 65536   # max points per grid step (lane axis); multiple of 128
NSPLIT = 2       # parallel split of the point axis (megacore on v7x)


def _round_up(x, m):
    return ((x + m - 1) // m) * m


def _moments_kernel(src_ref, tgt_ref, m_ref, ssum_ref, tsum_ref, ssq_ref):
    """Accumulate registration sufficient statistics over the point axis.

    src_ref/tgt_ref: (3, TN) lane-dense tiles (xyz on sublanes, points on lanes)
      m_ref   : (3, 3)  sum_n src_i * tgt_j   (cross moments)
      ssum_ref: (3, 1)  sum_n src_i
      tsum_ref: (3, 1)  sum_n tgt_i
      ssq_ref : (3, 1)  sum_n src_i ** 2
    Zero-padded points contribute nothing, so no masking is required.
    """
    @pl.when(pl.program_id(2) == 0)
    def _():
        m_ref[...] = jnp.zeros_like(m_ref)
        ssum_ref[...] = jnp.zeros_like(ssum_ref)
        tsum_ref[...] = jnp.zeros_like(tsum_ref)
        ssq_ref[...] = jnp.zeros_like(ssq_ref)

    s = src_ref[...]   # (3, TN) float32
    t = tgt_ref[...]   # (3, TN) float32

    # Cross moments on the MXU: contract the large lane (point) axis.
    m_ref[...] += jax.lax.dot_general(
        s, t, (((1,), (1,)), ((), ())), preferred_element_type=jnp.float32)
    # Per-coordinate sums / square sums: cheap lane reductions (VPU/XLU),
    # hidden under the DMA of the next tile.
    ssum_ref[...] += jnp.sum(s, axis=1, keepdims=True)
    tsum_ref[...] += jnp.sum(t, axis=1, keepdims=True)
    ssq_ref[...] += jnp.sum(s * s, axis=1, keepdims=True)


def _batched_moments(src_t, tgt_t, tn):
    """src_t/tgt_t: (B, 3, Npad) float32, lane-dense point clouds."""
    B, _, npad = src_t.shape
    assert tn % 128 == 0 and npad % (NSPLIT * tn) == 0
    ksteps = npad // (NSPLIT * tn)

    def in_map(s, b, k):
        return (b, 0, s * ksteps + k)

    def out_map(s, b, k):
        return (s, b, 0, 0)

    out_shape = (
        jax.ShapeDtypeStruct((NSPLIT, B, 3, 3), jnp.float32),
        jax.ShapeDtypeStruct((NSPLIT, B, 3, 1), jnp.float32),
        jax.ShapeDtypeStruct((NSPLIT, B, 3, 1), jnp.float32),
        jax.ShapeDtypeStruct((NSPLIT, B, 3, 1), jnp.float32),
    )
    out_specs = [
        pl.BlockSpec((None, None, 3, 3), out_map),
        pl.BlockSpec((None, None, 3, 1), out_map),
        pl.BlockSpec((None, None, 3, 1), out_map),
        pl.BlockSpec((None, None, 3, 1), out_map),
    ]

    m, ssum, tsum, ssq = pl.pallas_call(
        _moments_kernel,
        out_shape=out_shape,
        grid_spec=pltpu.PrefetchScalarGridSpec(
            num_scalar_prefetch=0,
            grid=(NSPLIT, B, ksteps),
            in_specs=[pl.BlockSpec((None, 3, tn), in_map),
                      pl.BlockSpec((None, 3, tn), in_map)],
            out_specs=out_specs,
        ),
        compiler_params=pltpu.CompilerParams(
            dimension_semantics=("parallel", "parallel", "arbitrary"),
            vmem_limit_bytes=32 * 1024 * 1024),
    )(src_t, tgt_t)

    # Reduce the per-core partial statistics (tiny).
    m = m.sum(axis=0)                 # (B, 3, 3)
    s_sum = ssum.sum(axis=0)[..., 0]  # (B, 3)
    t_sum = tsum.sum(axis=0)[..., 0]  # (B, 3)
    s_sq = ssq.sum(axis=0)[..., 0]    # (B, 3)
    return m, s_sum, t_sum, s_sq


def _registration_from_moments(m, s_sum, t_sum, s_sq, n_points, s_ref, t_ref,
                               estimate_rotation, estimate_scaling):
    """Closed-form (Umeyama) rigid+scale registration from sufficient stats.

    The statistics were computed on clouds shifted by (s_ref, t_ref); the
    covariance / variance terms are translation-invariant, and the reference
    points are re-added when recovering the translation.
    """
    b = m.shape[0]
    n = jnp.asarray(n_points, jnp.float32)

    mu_s = s_sum / n                      # (B, 3)  shifted means
    mu_t = t_sum / n                      # (B, 3)
    sq_src = jnp.sum(s_sq, axis=-1)       # (B,)    sum |src - s_ref|^2

    # Shifted moments: well-conditioned because the data was pre-centered
    # about its first point before entering the kernel.
    sigma = jnp.swapaxes(m, 1, 2) / n - mu_t[:, :, None] * mu_s[:, None, :]
    var_src = jnp.maximum(sq_src / n - jnp.sum(mu_s * mu_s, axis=-1), 1e-12)

    u, d, vt = jnp.linalg.svd(sigma)
    det_uv = jnp.linalg.det(u) * jnp.linalg.det(vt)
    # Sign fix on the LAST singular direction — valid because SVD returns
    # singular values in descending order (standard Umeyama construction).
    s_diag = jnp.stack(
        [jnp.ones_like(det_uv), jnp.ones_like(det_uv), jnp.sign(det_uv)],
        axis=-1)
    rot = jnp.einsum('bij,bj,bjk->bik', u, s_diag, vt)

    if estimate_scaling:
        scale = jnp.sum(d * s_diag, axis=-1) / var_src
    else:
        scale = jnp.ones((b,), jnp.float32)
    if not estimate_rotation:
        rot = jnp.broadcast_to(jnp.eye(3, dtype=jnp.float32), rot.shape)

    mu_s_full = mu_s + s_ref              # true (un-shifted) centroids
    mu_t_full = mu_t + t_ref
    trans = mu_t_full - scale[:, None] * jnp.einsum('bij,bj->bi', rot, mu_s_full)

    # 4x4: pure rotation (scale not folded in) + translation, matching module.
    top = jnp.concatenate([rot, trans[:, :, None]], axis=2)     # (B, 3, 4)
    bottom = jnp.broadcast_to(
        jnp.array([[[0.0, 0.0, 0.0, 1.0]]], jnp.float32), (b, 1, 4))
    return jnp.concatenate([top, bottom], axis=1).astype(jnp.float32)


@functools.partial(jax.jit, static_argnums=(2, 3, 4, 5))
def _forward(src, tgt, tn, ksteps, estimate_rotation, estimate_scaling):
    B, N, _ = src.shape
    npad = NSPLIT * ksteps * tn

    # Pre-center about the first point of each cloud (numerical robustness of
    # the shifted-moment covariance). XLA fuses this elementwise shift with the
    # pad / transpose layout plumbing below, so it costs no extra HBM pass.
    s_ref = src[:, 0, :]                  # (B, 3)
    t_ref = tgt[:, 0, :]                  # (B, 3)
    src = src - s_ref[:, None, :]
    tgt = tgt - t_ref[:, None, :]

    if npad != N:
        # Zero-padded points contribute nothing to any accumulated statistic.
        src = jnp.pad(src, ((0, 0), (0, npad - N), (0, 0)))
        tgt = jnp.pad(tgt, ((0, 0), (0, npad - N), (0, 0)))
    # Lane-dense layout plumbing: xyz on sublanes, points on lanes, so the
    # kernel streams fully packed 128-lane tiles.
    src_t = jnp.swapaxes(src, 1, 2)   # (B, 3, Npad)
    tgt_t = jnp.swapaxes(tgt, 1, 2)   # (B, 3, Npad)

    m, s_sum, t_sum, s_sq = _batched_moments(src_t, tgt_t, tn)
    return _registration_from_moments(
        m, s_sum, t_sum, s_sq, N, s_ref, t_ref,
        estimate_rotation, estimate_scaling)


class TeaserPlusPlusPallas:
    """Pallas/JAX counterpart of TeaserPlusPlus.forward (no learned params)."""

    def __init__(self, estimate_rotation=True, estimate_scaling=True,
                 correspondences=None, voxel_size=0.05):
        self.estimate_rotation = estimate_rotation
        self.estimate_scaling = estimate_scaling
        if correspondences is not None:
            assert correspondences in ['fpfh']
        self.correspondences = correspondences
        assert isinstance(voxel_size, (float, int)) and voxel_size > 0
        self.voxel_size = voxel_size

    def __call__(self, inputs):
        src = inputs['src_pc']['pos'].astype(jnp.float32)   # (B, N, 3)
        tgt = inputs['tgt_pc']['pos'].astype(jnp.float32)   # (B, N, 3)
        # TODO(synk): FPFH correspondence extraction (Open3D/cKDTree) and the
        # GNC-TLS / max-clique robust outlier loop of TEASER++ are external
        # CPU libraries with no clean Pallas equivalent; this implements the
        # closed-form correspondence-based rigid(+scale) registration over the
        # given point pairs.
        B, N, _ = src.shape
        assert tgt.shape == (B, N, 3) and N > 0
        # Tile selection: largest lane-dense tile that keeps padding < 128
        # points per (split, k-step) while staying within TN_MAX per step.
        ksteps = max(1, -(-N // (NSPLIT * TN_MAX)))
        tn = _round_up(max(1, -(-N // (NSPLIT * ksteps))), 128)
        return _forward(src, tgt, tn, ksteps, self.estimate_rotation,
                        self.estimate_scaling)


if __name__ == "__main__":
    key = jax.random.PRNGKey(0)
    B, N = 2, 256
    src = jax.random.normal(key, (B, N, 3), jnp.float32)

    # Deterministic ground-truth similarity transforms (rotation about z).
    angles = jnp.array([0.3, -0.7], jnp.float32)
    c, s = jnp.cos(angles), jnp.sin(angles)
    zeros, ones = jnp.zeros_like(c), jnp.ones_like(c)
    rot_gt = jnp.stack([
        jnp.stack([c, -s, zeros], axis=-1),
        jnp.stack([s, c, zeros], axis=-1),
        jnp.stack([zeros, zeros, ones], axis=-1),
    ], axis=1)                                               # (B, 3, 3)
    scale_gt = jnp.array([1.2, 0.8], jnp.float32)
    trans_gt = jnp.array([[0.5, -0.2, 0.3], [1.0, 0.1, -0.4]], jnp.float32)
    tgt = (scale_gt[:, None, None]
           * jnp.einsum('bij,bnj->bni', rot_gt, src)
           + trans_gt[:, None, :])

    model = TeaserPlusPlusPallas(estimate_rotation=True, estimate_scaling=True)
    inputs = {'src_pc': {'pos': src}, 'tgt_pc': {'pos': tgt}}
    T = jax.block_until_ready(model(inputs))

    assert T.shape == (B, 4, 4) and T.dtype == jnp.float32
    assert jnp.allclose(T[:, :3, :3], rot_gt, atol=1e-2)
    assert jnp.allclose(T[:, :3, 3], trans_gt, atol=1e-2)
    assert jnp.allclose(T[:, 3, :], jnp.array([0.0, 0.0, 0.0, 1.0]), atol=1e-6)
    print("KERNEL_OK")
</pallas_src>

<mosaic_0001>
module attributes {stable_mosaic.version = 11 : i64} {
  func.func @_moments_kernel(%arg0: i32, %arg1: i32, %arg2: i32, %arg3: memref<1x3x128xf32, #tpu.memory_space<vmem>>, %arg4: memref<1x3x128xf32, #tpu.memory_space<vmem>>, %arg5: memref<1x1x3x3xf32, #tpu.memory_space<vmem>>, %arg6: memref<1x1x3x1xf32, #tpu.memory_space<vmem>>, %arg7: memref<1x1x3x1xf32, #tpu.memory_space<vmem>>, %arg8: memref<1x1x3x1xf32, #tpu.memory_space<vmem>>) attributes {dimension_semantics = [#tpu.dimension_semantics<parallel>, #tpu.dimension_semantics<parallel>, #tpu.dimension_semantics<arbitrary>], iteration_bounds = array<i64: 2, 2, 1>, scalar_prefetch = 0 : i64, scratch_operands = 0 : i64, tpu.core_type = #tpu.core_type<tc>, window_params = [{transform_indices = @transform_0, window_bounds = array<i64: 1, 3, 128>}, {transform_indices = @transform_1, window_bounds = array<i64: 1, 3, 128>}, {transform_indices = @transform_2, window_bounds = array<i64: 1, 1, 3, 3>}, {transform_indices = @transform_3, window_bounds = array<i64: 1, 1, 3, 1>}, {transform_indices = @transform_4, window_bounds = array<i64: 1, 1, 3, 1>}, {transform_indices = @transform_5, window_bounds = array<i64: 1, 1, 3, 1>}]} {
    %c0_i32 = arith.constant 0 : i32
    %0 = arith.cmpi eq, %arg2, %c0_i32 : i32
    %1 = arith.extui %0 : i1 to i32
    %c0_i32_0 = arith.constant 0 : i32
    %2 = arith.cmpi ne, %1, %c0_i32_0 : i32
    scf.if %2 {
      %cst_41 = arith.constant 0.000000e+00 : f32
      %39 = vector.broadcast %cst_41 : f32 to vector<3x3xf32>
      %c0_42 = arith.constant 0 : index
      %c0_43 = arith.constant 0 : index
      %c0_44 = arith.constant 0 : index
      %c0_45 = arith.constant 0 : index
      %40 = vector.load %arg5[%c0_42, %c0_43, %c0_44, %c0_45] : memref<1x1x3x3xf32, #tpu.memory_space<vmem>>, vector<1x1x3x3xf32>
      %41 = vector.shape_cast %40 : vector<1x1x3x3xf32> to vector<3x3xf32>
      %42 = vector.shape_cast %39 : vector<3x3xf32> to vector<1x1x3x3xf32>
      tpu.vector_store %arg5[%c0_42, %c0_43, %c0_44, %c0_45], %42 {strides = array<i32>} : memref<1x1x3x3xf32, #tpu.memory_space<vmem>>, vector<1x1x3x3xf32>,
      %cst_46 = arith.constant 0.000000e+00 : f32
      %43 = vector.broadcast %cst_46 : f32 to vector<3x1xf32>
      %c0_47 = arith.constant 0 : index
      %c0_48 = arith.constant 0 : index
      %c0_49 = arith.constant 0 : index
      %c0_50 = arith.constant 0 : index
      %44 = vector.load %arg6[%c0_47, %c0_48, %c0_49, %c0_50] : memref<1x1x3x1xf32, #tpu.memory_space<vmem>>, vector<1x1x3x1xf32>
      %45 = vector.shape_cast %44 : vector<1x1x3x1xf32> to vector<3x1xf32>
      %46 = vector.shape_cast %43 : vector<3x1xf32> to vector<1x1x3x1xf32>
      tpu.vector_store %arg6[%c0_47, %c0_48, %c0_49, %c0_50], %46 {strides = array<i32>} : memref<1x1x3x1xf32, #tpu.memory_space<vmem>>, vector<1x1x3x1xf32>,
      %cst_51 = arith.constant 0.000000e+00 : f32
      %47 = vector.broadcast %cst_51 : f32 to vector<3x1xf32>
      %c0_52 = arith.constant 0 : index
      %c0_53 = arith.constant 0 : index
      %c0_54 = arith.constant 0 : index
      %c0_55 = arith.constant 0 : index
      %48 = vector.load %arg7[%c0_52, %c0_53, %c0_54, %c0_55] : memref<1x1x3x1xf32, #tpu.memory_space<vmem>>, vector<1x1x3x1xf32>
      %49 = vector.shape_cast %48 : vector<1x1x3x1xf32> to vector<3x1xf32>
      %50 = vector.shape_cast %47 : vector<3x1xf32> to vector<1x1x3x1xf32>
      tpu.vector_store %arg7[%c0_52, %c0_53, %c0_54, %c0_55], %50 {strides = array<i32>} : memref<1x1x3x1xf32, #tpu.memory_space<vmem>>, vector<1x1x3x1xf32>,
      %cst_56 = arith.constant 0.000000e+00 : f32
      %51 = vector.broadcast %cst_56 : f32 to vector<3x1xf32>
      %c0_57 = arith.constant 0 : index
      %c0_58 = arith.constant 0 : index
      %c0_59 = arith.constant 0 : index
      %c0_60 = arith.constant 0 : index
      %52 = vector.load %arg8[%c0_57, %c0_58, %c0_59, %c0_60] : memref<1x1x3x1xf32, #tpu.memory_space<vmem>>, vector<1x1x3x1xf32>
      %53 = vector.shape_cast %52 : vector<1x1x3x1xf32> to vector<3x1xf32>
      %54 = vector.shape_cast %51 : vector<3x1xf32> to vector<1x1x3x1xf32>
      tpu.vector_store %arg8[%c0_57, %c0_58, %c0_59, %c0_60], %54 {strides = array<i32>} : memref<1x1x3x1xf32, #tpu.memory_space<vmem>>, vector<1x1x3x1xf32>,
    } else {
    }
    %c0 = arith.constant 0 : index
    %c0_1 = arith.constant 0 : index
    %c0_2 = arith.constant 0 : index
    %3 = vector.load %arg3[%c0, %c0_1, %c0_2] : memref<1x3x128xf32, #tpu.memory_space<vmem>>, vector<1x3x128xf32>
    %4 = vector.shape_cast %3 : vector<1x3x128xf32> to vector<3x128xf32>
    %c0_3 = arith.constant 0 : index
    %c0_4 = arith.constant 0 : index
    %c0_5 = arith.constant 0 : index
    %5 = vector.load %arg4[%c0_3, %c0_4, %c0_5] : memref<1x3x128xf32, #tpu.memory_space<vmem>>, vector<1x3x128xf32>
    %6 = vector.shape_cast %5 : vector<1x3x128xf32> to vector<3x128xf32>
    %c0_6 = arith.constant 0 : index
    %c0_7 = arith.constant 0 : index
    %c0_8 = arith.constant 0 : index
    %c0_9 = arith.constant 0 : index
    %7 = vector.load %arg5[%c0_6, %c0_7, %c0_8, %c0_9] : memref<1x1x3x3xf32, #tpu.memory_space<vmem>>, vector<1x1x3x3xf32>
    %8 = vector.shape_cast %7 : vector<1x1x3x3xf32> to vector<3x3xf32>
    %cst = arith.constant dense<0.000000e+00> : vector<3x3xf32>
    %9 = tpu.matmul %4, %6, %cst {dimension_numbers = #tpu.dot_dimension_numbers<[1], [1], [0], [0], [0, 0, 1, 0], [], []>} : vector<3x128xf32>, vector<3x128xf32>, vector<3x3xf32> -> vector<3x3xf32>
    %10 = arith.addf %8, %9 : vector<3x3xf32>
    %c0_10 = arith.constant 0 : index
    %c0_11 = arith.constant 0 : index
    %c0_12 = arith.constant 0 : index
    %c0_13 = arith.constant 0 : index
    %11 = vector.load %arg5[%c0_10, %c0_11, %c0_12, %c0_13] : memref<1x1x3x3xf32, #tpu.memory_space<vmem>>, vector<1x1x3x3xf32>
    %12 = vector.shape_cast %11 : vector<1x1x3x3xf32> to vector<3x3xf32>
    %13 = vector.shape_cast %10 : vector<3x3xf32> to vector<1x1x3x3xf32>
    tpu.vector_store %arg5[%c0_10, %c0_11, %c0_12, %c0_13], %13 {strides = array<i32>} : memref<1x1x3x3xf32, #tpu.memory_space<vmem>>, vector<1x1x3x3xf32>,
    %c0_14 = arith.constant 0 : index
    %c0_15 = arith.constant 0 : index
    %c0_16 = arith.constant 0 : index
    %c0_17 = arith.constant 0 : index
    %14 = vector.load %arg6[%c0_14, %c0_15, %c0_16, %c0_17] : memref<1x1x3x1xf32, #tpu.memory_space<vmem>>, vector<1x1x3x1xf32>
    %15 = vector.shape_cast %14 : vector<1x1x3x1xf32> to vector<3x1xf32>
    %cst_18 = arith.constant dense<0.000000e+00> : vector<3xf32>
    %16 = vector.multi_reduction <add>, %4, %cst_18 [1] : vector<3x128xf32> to vector<3xf32>
    %17 = vector.shape_cast %16 : vector<3xf32> to vector<3x1xf32>
    %18 = arith.addf %15, %17 : vector<3x1xf32>
    %c0_19 = arith.constant 0 : index
    %c0_20 = arith.constant 0 : index
    %c0_21 = arith.constant 0 : index
    %c0_22 = arith.constant 0 : index
    %19 = vector.load %arg6[%c0_19, %c0_20, %c0_21, %c0_22] : memref<1x1x3x1xf32, #tpu.memory_space<vmem>>, vector<1x1x3x1xf32>
    %20 = vector.shape_cast %19 : vector<1x1x3x1xf32> to vector<3x1xf32>
    %21 = vector.shape_cast %18 : vector<3x1xf32> to vector<1x1x3x1xf32>
    tpu.vector_store %arg6[%c0_19, %c0_20, %c0_21, %c0_22], %21 {strides = array<i32>} : memref<1x1x3x1xf32, #tpu.memory_space<vmem>>, vector<1x1x3x1xf32>,
    %c0_23 = arith.constant 0 : index
    %c0_24 = arith.constant 0 : index
    %c0_25 = arith.constant 0 : index
    %c0_26 = arith.constant 0 : index
    %22 = vector.load %arg7[%c0_23, %c0_24, %c0_25, %c0_26] : memref<1x1x3x1xf32, #tpu.memory_space<vmem>>, vector<1x1x3x1xf32>
    %23 = vector.shape_cast %22 : vector<1x1x3x1xf32> to vector<3x1xf32>
    %cst_27 = arith.constant dense<0.000000e+00> : vector<3xf32>
    %24 = vector.multi_reduction <add>, %6, %cst_27 [1] : vector<3x128xf32> to vector<3xf32>
    %25 = vector.shape_cast %24 : vector<3xf32> to vector<3x1xf32>
    %26 = arith.addf %23, %25 : vector<3x1xf32>
    %c0_28 = arith.constant 0 : index
    %c0_29 = arith.constant 0 : index
    %c0_30 = arith.constant 0 : index
    %c0_31 = arith.constant 0 : index
    %27 = vector.load %arg7[%c0_28, %c0_29, %c0_30, %c0_31] : memref<1x1x3x1xf32, #tpu.memory_space<vmem>>, vector<1x1x3x1xf32>
    %28 = vector.shape_cast %27 : vector<1x1x3x1xf32> to vector<3x1xf32>
    %29 = vector.shape_cast %26 : vector<3x1xf32> to vector<1x1x3x1xf32>
    tpu.vector_store %arg7[%c0_28, %c0_29, %c0_30, %c0_31], %29 {strides = array<i32>} : memref<1x1x3x1xf32, #tpu.memory_space<vmem>>, vector<1x1x3x1xf32>,
    %c0_32 = arith.constant 0 : index
    %c0_33 = arith.constant 0 : index
    %c0_34 = arith.constant 0 : index
    %c0_35 = arith.constant 0 : index
    %30 = vector.load %arg8[%c0_32, %c0_33, %c0_34, %c0_35] : memref<1x1x3x1xf32, #tpu.memory_space<vmem>>, vector<1x1x3x1xf32>
    %31 = vector.shape_cast %30 : vector<1x1x3x1xf32> to vector<3x1xf32>
    %32 = arith.mulf %4, %4 : vector<3x128xf32>
    %cst_36 = arith.constant dense<0.000000e+00> : vector<3xf32>
    %33 = vector.multi_reduction <add>, %32, %cst_36 [1] : vector<3x128xf32> to vector<3xf32>
    %34 = vector.shape_cast %33 : vector<3xf32> to vector<3x1xf32>
    %35 = arith.addf %31, %34 : vector<3x1xf32>
    %c0_37 = arith.constant 0 : index
    %c0_38 = arith.constant 0 : index
    %c0_39 = arith.constant 0 : index
    %c0_40 = arith.constant 0 : index
    %36 = vector.load %arg8[%c0_37, %c0_38, %c0_39, %c0_40] : memref<1x1x3x1xf32, #tpu.memory_space<vmem>>, vector<1x1x3x1xf32>
    %37 = vector.shape_cast %36 : vector<1x1x3x1xf32> to vector<3x1xf32>
    %38 = vector.shape_cast %35 : vector<3x1xf32> to vector<1x1x3x1xf32>
    tpu.vector_store %arg8[%c0_37, %c0_38, %c0_39, %c0_40], %38 {strides = array<i32>} : memref<1x1x3x1xf32, #tpu.memory_space<vmem>>, vector<1x1x3x1xf32>,
    return
  }
  func.func @transform_0(%arg0: i32, %arg1: i32, %arg2: i32) -> (i32, i32, i32) {
    %c1_i32 = arith.constant 1 : i32
    %0 = arith.muli %arg0, %c1_i32 : i32
    %1 = arith.addi %0, %arg2 : i32
    %c0_i32 = arith.constant 0 : i32
    %c0_i32_0 = arith.constant 0 : i32
    return %arg1, %c0_i32, %1 : i32, i32, i32
  }
  func.func @transform_1(%arg0: i32, %arg1: i32, %arg2: i32) -> (i32, i32, i32) {
    %c1_i32 = arith.constant 1 : i32
    %0 = arith.muli %arg0, %c1_i32 : i32
    %1 = arith.addi %0, %arg2 : i32
    %c0_i32 = arith.constant 0 : i32
    %c0_i32_0 = arith.constant 0 : i32
    return %arg1, %c0_i32, %1 : i32, i32, i32
  }
  func.func @transform_2(%arg0: i32, %arg1: i32, %arg2: i32) -> (i32, i32, i32, i32) {
    %c0_i32 = arith.constant 0 : i32
    %c0_i32_0 = arith.constant 0 : i32
    %c0_i32_1 = arith.constant 0 : i32
    return %arg0, %arg1, %c0_i32, %c0_i32_0 : i32, i32, i32, i32
  }
  func.func @transform_3(%arg0: i32, %arg1: i32, %arg2: i32) -> (i32, i32, i32, i32) {
    %c0_i32 = arith.constant 0 : i32
    %c0_i32_0 = arith.constant 0 : i32
    %c0_i32_1 = arith.constant 0 : i32
    return %arg0, %arg1, %c0_i32, %c0_i32_0 : i32, i32, i32, i32
  }
  func.func @transform_4(%arg0: i32, %arg1: i32, %arg2: i32) -> (i32, i32, i32, i32) {
    %c0_i32 = arith.constant 0 : i32
    %c0_i32_0 = arith.constant 0 : i32
    %c0_i32_1 = arith.constant 0 : i32
    return %arg0, %arg1, %c0_i32, %c0_i32_0 : i32, i32, i32, i32
  }
  func.func @transform_5(%arg0: i32, %arg1: i32, %arg2: i32) -> (i32, i32, i32, i32) {
    %c0_i32 = arith.constant 0 : i32
    %c0_i32_0 = arith.constant 0 : i32
    %c0_i32_1 = arith.constant 0 : i32
    return %arg0, %arg1, %c0_i32, %c0_i32_0 : i32, i32, i32, i32
  }
}

</mosaic_0001>

<bundles_post_ra>
// kernel: custom-call.57
= control target key start
LH: loop header
LB: loop body
LE: loop exit
PB: predicated region body
PF: predicated region fallthrough
CT: control target
= control target key end

     0   :  { %s651_s9 = smov 0   ;;  %s653_s10 = smov 0   ;;  %s801_s0 = inlined_call_operand.vmem [shape: f32[2,6,3], index: 0, kind: input, shape index: {}]   ;;  %s802_s1 = inlined_call_operand.vmem [shape: f32[2,6,3], index: 1, kind: output, shape index: {0}]   ;;  %s803_s2 = inlined_call_operand.vmem [shape: f32[2,3], index: 2, kind: output, shape index: {1}]  }
   0x1   :  { %s655_s11 = smov 0   ;;  %s657_s12 = smov 0  }
   0x2   :  { %s659_s13 = smov 0  }
   0x3 LB: > { %s28_s14 = sadd.s32 1, %s624_s12  ;;  %s506_s15 = sadd.s32 4294967295, %s628_s13   ;;  %s628_s13 = sphi %s659_s13, %s9_s13   ;;  %s624_s12 = sphi %s657_s12, %s810_s12   ;;  %s620_s11 = sphi %s655_s11, %s809_s11   ;;  %s616_s10 = sphi %s653_s10, %s808_s10   ;;  %s612_s9 = sphi %s651_s9, %s807_s9  }
   0x4   : > { %p30_p0 = scmp.ge.s32.totalorder %s28_s14, 2  ;;  %s33_s16 = ssub.s32 0, %s624_s12 }
   0x5   : > { %s508_s17 = smin.u32 %s624_s12, %s33_s16  ;;  %p57_p1 = scmp.ne.s32.totalorder %s616_s10, %s612_s9 }
   0x6   : > { %s812_s14 = smov (%p30_p0, %s28_s14), 0  ;;  %s35_s18 = sshrl.u32 %s508_s17, 3 }
   0x7   : > { %s39_s19 = ssub.s32 0, %s812_s14  ;;  %p58_p2 = scmp.eq.s32.totalorder %s506_s15, 1 }
   0x8   : > { %s509_s20 = smin.u32 %s39_s19, %s812_s14  ;;  %s47_s24 = sadd.s32 1, %s616_s10 }
   0x9   : > { %s41_s21 = sshrl.u32 %s509_s20, 3  ;;  %p686_p3 = por %p58_p2, %p57_p1 }
   0xa   : > { %s44_s23 = ssub.s32 %s35_s18, %s41_s21  ;;  %p511_p5 = scmp.ge.s32.totalorder %s628_s13, 2 }
   0xb   : > { %p45_p4 = scmp.eq.s32.totalorder %s44_s23, 0  ;;  %s82_s26 = sand.u32 (!%p511_p5), 1, %s628_s13  }
   0xc   : > { %80 = sbr.rel (%p511_p5) target bundleno = 19 (0x13), region = 16  ;;  %s513_s27 = sshll.u32 (!%p511_p5), %s624_s12, 3 }
   0xd   : > { %s692_s25 = scalar_select %p45_p4, %s616_s10, %s47_s24  }
   0xe   : > { %s512_s28 = sshll.u32 (!%p511_p5), %s82_s26, 3  ;;  %s88_s3 = scalar_lea.vmem (!%p511_p5), %s801_s0, %s513_s27 }
   0xf   : > { %s84_s4 = scalar_lea.vmem (!%p511_p5), [#allocation0], %s512_s28 }
  0x11   : > { %v117_v0 = vld [vmem:[%s88_s3] sm:$0xff] }
  0x12   : > { %118 = vst [vmem:[%s84_s4] sm:$0xff] %v117_v0 }
  0x13 PF: > { %p514_p6 = scmp.ge.s32.totalorder %s628_s13, 1  ;;  %p123_p7 = scmp.lt.s32.totalorder %s628_s13, 3 }
  0x15   : > { %p124_p8 = pnand %p514_p6, %p123_p7 }
  0x17   : > { %127 = sbr.rel (%p124_p8) target bundleno = 336 (0x150), region = 54 }
  0x1c   : > { %s130_s5 = sand.u32 1, %s506_s15   ;;  %s144_s6 = sand.u32 1, %s612_s9   ;;  %v634_v2 = vmov 0.0  }
  0x1d   : > { %s515_s7 = sshll.u32 %s130_s5, 3  ;;  %s703_s8 = sshll.u32 %s144_s6, 1 }
  0x1e   : > { %s153_s16 = sand.u32 7, %s620_s11   ;;  %s132_s17 = scalar_lea.vmem [#allocation0], %s515_s7 }
  0x1f   : > { %v155_v1 = vld [vmem:[%s132_s17] sm:$0xff]  ;;  %s706_s18 = scalar_lea.vmem [#allocation1], %s515_s7  ;;  %s709_s19 = scalar_lea.vmem [#allocation2], %s153_s16 }
  0x20   : > { %156 = vst [vmem:[%s706_s18] sm:$0xff] %v155_v1  ;;  %157 = vst [vmem:[%s709_s19] sm:$0x1] %v634_v2  ;;  %s146_s15 = scalar_lea.vmem [#allocation3], %s703_s8  ;;  %s713_s20 = smov 0  }
  0x21 LB: >> { %v165_v3 = vlaneseq  ;;  %v722_v5 = vstv %s632_s20  ;;  %s192_s9 = scalar_lea.vmem %s706_s18, %s632_s20 [#allocation1]  ;;  %s250_s21 = scalar_lea.vmem [#allocation4], %s632_s20  ;;  %v635_v59 = vmov 1.0   ;;  %s632_s20 = sphi %s713_s20, %s163_s20  }
  0x22   : >> { %s267_s23 = smov [#allocation4] }
  0x23   : >> { %v719_v4 = vshrl.u32 %v165_v3, 7  ;;  %v244_v48 = vand.u32 127, %v165_v3 }
  0x25   : >> { %vm169_vm0 = vcmp.gt.s32.totalorder %v719_v4, %v722_v5  ;;  %vm170_vm1 = vcmp.lt.s32.totalorder %v719_v4, 6  ;;  %v231_v4 = vmov %v719_v4  ;;  %vm740_vm12 = vcmp.eq.s32.totalorder %v244_v48, %v722_v5 }
  0x26   : >> { %vm171_vm2 = vmand %vm169_vm0, %vm170_vm1  ;;  %vm235_vm9 = vcmp.gt.s32.totalorder %v231_v4, %v722_v5  ;;  %vm236_vm10 = vcmp.lt.s32.totalorder %v231_v4, 6  ;;  %v270_v4 = vmov %v719_v4  ;;  %vm296_vm15 = vcmp.gt.s32.totalorder %v244_v48, %v722_v5 }
  0x27   : >> { %v164_v6 = vld [vmem:[%s706_s18] sm:$0xff]  ;;  %v193_v15 = vld [vmem:[%s192_s9] ss:$0 sm:$0xff]  ;;  %s228_s18 = smov %s706_s18  ;;  %vm237_vm11 = vmand %vm235_vm9, %vm236_vm10  ;;  %vm275_vm13 = vcmp.lt.s32.totalorder %v270_v4, 6  ;;  %v287_v4 = vmov %v719_v4 }
  0x28   : >> { %v172_v7 = vsel %vm171_vm2, %v164_v6, 0.0  ;;  %v194_v16 = vand.u32 2147483647, %v193_v15  ;;  %vm219_vm8 = vcmp.lt.f32.partialorder %v193_v15, 0.0  ;;  %v232_v45 = vld [vmem:[%s228_s18] sm:$0xff]  ;;  %s266_s18 = smov %s706_s18  ;;  %vm304_vm14 = vcmp.ge.s32.totalorder %v287_v4, %v722_v5 }
  0x29   : >> { %v173_v8 = vmul.f32 %v172_v7, %v172_v7  ;;  %v238_v49 = vsel %vm237_vm11, %v232_v45, 0.0  ;;  %v263_v60 = vld [vmem:[%s709_s19] ss:$0 sm:$0xff]  ;;  %vm305_vm0 = vmand %vm740_vm12, %vm304_vm14 }
  0x2a   : >> { %v195_v21 = vmax.f32 %v194_v16, 0.0  ;;  %v273_v63 = vld [vmem:[%s266_s18] sm:$0xff]  ;;  %s283_s18 = smov %s266_s18 }
  0x2b   : >> { %v174_v9 = vrot.slane %v173_v8, 4  ;;  %s308_s24 = scalar_lea.vmem %s283_s18, %s632_s20  ;;  %s163_s20 = sadd.s32 1, %s632_s20  }
  0x2c   : >> { %p160_p9 = scmp.ge.s32.totalorder %s163_s20, 3  }
  0x2d   : >> { %v175_v10 = vadd.f32 %v174_v9, %v173_v8  ;;  %s521_s26 = sshll.u32 (%p160_p9), %s620_s11, 3 }
  0x2e   : > { %s335_s29 = scalar_lea.vmem (%p160_p9), %s802_s1, %s521_s26 }
  0x2f   : >> { %v176_v11 = vrot.slane %v175_v10, 2 }
  0x31   : >> { %v177_v12 = vadd.f32 %v176_v11, %v175_v10 }
  0x33   : >> { %v178_v13 = vrot.slane %v177_v12, 1 }
  0x35   : >> { %v179_v14 = vadd.f32 %v178_v13, %v177_v12  ;;  %v294_v13 = vld [vmem:[%s283_s18] sm:$0xff] }
  0x37   : >> { %576 = vrsqrt.f32 %v179_v14  ;;  %vm182_vm3 = vcmp.eq.f32.partialorder %v179_v14, inf  ;;  %v185_v18 = vand.u32 2147483648, %v179_v14  ;;  %vm184_vm4 = vcmp.eq.f32.partialorder %v179_v14, 0.0 }
  0x44   : >> { %v577_v17 = vpop.eup %576 }
  0x45   : >> { %v181_v19 = vmul.f32 %v577_v17, %v179_v14 }
  0x47   : >> { %v183_v20 = vsel %vm182_vm3, %v179_v14, %v181_v19 }
  0x48   : >> { %v186_v22 = vsel %vm184_vm4, %v185_v18, %v183_v20 }
  0x49   : >> { %v196_v23 = vand.u32 2147483647, %v186_v22 }
  0x4b   : >> { %v197_v24 = vmax.f32 %v195_v21, %v196_v23 }
  0x4d   : >> { %578 = vrcp.f32 %v197_v24  ;;  %vm209_vm7 = vcmp.eq.f32.partialorder %v197_v24, 0.0 }
  0x5a   : >> { %v579_v25 = vpop.eup %578 }
  0x5b   : >> { %v199_v26 = vmul.f32 %v579_v25, %v194_v16  ;;  %v202_v27 = vmul.f32 0.0, %v579_v25  ;;  %v206_v28 = vmul.f32 %v579_v25, %v196_v23 }
  0x5d   : >> { %v200_v29 = vmul.f32 %v199_v26, %v199_v26  ;;  %v203_v30 = vmul.f32 %v202_v27, %v202_v27  ;;  %v207_v31 = vmul.f32 %v206_v28, %v206_v28 }
  0x5f   : >> { %v204_v32 = vadd.f32 %v203_v30, %v200_v29 }
  0x61   : >> { %v208_v33 = vadd.f32 %v207_v31, %v204_v32 }
  0x63   : >> { %580 = vrsqrt.f32 %v208_v33  ;;  %vm212_vm5 = vcmp.eq.f32.partialorder %v208_v33, inf  ;;  %v215_v35 = vand.u32 2147483648, %v208_v33  ;;  %vm214_vm6 = vcmp.eq.f32.partialorder %v208_v33, 0.0 }
  0x70   : >> { %v581_v34 = vpop.eup %580 }
  0x71   : >> { %v211_v36 = vmul.f32 %v581_v34, %v208_v33 }
  0x73   : >> { %v213_v37 = vsel %vm212_vm5, %v208_v33, %v211_v36 }
  0x74   : >> { %v216_v38 = vsel %vm214_vm6, %v215_v35, %v213_v37 }
  0x75   : >> { %v217_v39 = vmul.f32 %v216_v38, %v197_v24 }
  0x77   : >> { %v218_v40 = vsel %vm209_vm7, 0.0, %v217_v39 }
  0x78   : >> { %v220_v41 = vxor.u32 2147483648, %v218_v40 }
  0x7a   : >> { %v221_v42 = vsel %vm219_vm8, %v218_v40, %v220_v41 }
  0x7b   : >> { %v732_v43 = vsel %vm184_vm4, %v193_v15, %v221_v42  ;;  %582 = vrcp.f32 %v221_v42  ;;  %v222_v46 = vsub.f32 %v221_v42, %v193_v15 }
  0x7c   : >> { %v227_v44 = vsub.f32 %v193_v15, %v732_v43 }
  0x7e   : >> { %584 = vrcp.f32 %v227_v44 }
  0x88   : >> { %v583_v47 = vpop.eup %582 }
  0x89   : >> { %v224_v50 = vmul.f32 %v583_v47, %v222_v46 }
  0x8b   : >> { %v585_v51 = vpop.eup %584  ;;  %v226_v55 = vsel %vm184_vm4, 0.0, %v224_v50 }
  0x8c   : >> { %v240_v52 = vmul.f32 %v585_v51, %v238_v49  ;;  %v256_v57 = vsel %vm740_vm12, %v226_v55, 0.0 }
  0x8e   : >> { %v241_v54 = vsel %vm184_vm4, 0.0, %v240_v52 }
  0x8f   : >> { %v246_v56 = vsel %vm740_vm12, %v241_v54, 0.0 }
  0x90   : >> { %247 = vadd.xlane.f32.xlu0 %v246_v56 }
  0x94   : >> { %257 = vadd.xlane.f32.xlu0 %v256_v57 }
 0x119   : >> { %v248_v58 = vpop.xlane.xlu0 %247 }
 0x11a   : >> { %249 = vst [vmem:[#allocation4] sm:$0xff] %v248_v58 }
 0x11b   : >> { %251 = vst [vmem:[%s250_s21] sm:$0x1] %v635_v59 }
 0x11d   : >> { %v258_v61 = vpop.xlane.xlu0 %257 }
 0x11e   : >> { %v264_v62 = vsel %vm740_vm12, %v258_v61, %v263_v60 }
 0x11f   : >> { %265 = vst [vmem:[%s709_s19] sm:$0x1] %v264_v62 }
 0x122   : >> { %v272_v0 = vld [vmem:[%s267_s23] sm:$0xff]  ;;  %s284_s23 = smov %s267_s23 }
 0x123   : >> { %v274_v1 = vmul.f32 %v273_v63, %v272_v0  ;;  %v292_v12 = vld [vmem:[%s284_s23] sm:$0xff] }
 0x125   : >> { %v276_v2 = vsel %vm275_vm13, %v274_v1, 0.0 }
 0x126   : >> { %v277_v3 = vrot.slane %v276_v2, 4  ;;  %v320_v4 = vld [vmem:[#allocation2] sm:$0x3] (%p160_p9) }
 0x127   : > { %323 = vst [vmem:[%s146_s15] sm:$0x3] (%p160_p9), %v320_v4 }
 0x128   : >> { %v278_v6 = vadd.f32 %v277_v3, %v276_v2 }
 0x12a   : >> { %v279_v7 = vrot.slane %v278_v6, 2 }
 0x12c   : >> { %v280_v8 = vadd.f32 %v279_v7, %v278_v6 }
 0x12e   : >> { %v281_v9 = vrot.slane %v280_v8, 1 }
 0x130   : >> { %v282_v10 = vadd.f32 %v281_v9, %v280_v8 }
 0x132   : >> { %v288_v11 = vmul.f32 %v282_v10, %v258_v61 }
 0x134   : >> { %v293_v14 = vmul.f32 %v292_v12, %v288_v11 }
 0x136   : >> { %v297_v15 = vsub.f32 %v294_v13, %v293_v14 }
 0x138   : >> { %v298_v16 = vsel %vm296_vm15, %v297_v15, %v294_v13 }
 0x139   : >> { %v306_v17 = vsel %vm305_vm0, %v292_v12, %v298_v16 }
 0x13a   : >> { %307 = vst [vmem:[%s283_s18] sm:$0xff] %v306_v17 }
 0x13f   : > { %162 = sbr.rel (!%p160_p9) target bundleno = 33 (0x21), region = 175 }
 0x141   : >> { %v309_v18 = vld [vmem:[%s308_s24] ss:$0 sm:$0xff] }
 0x142   : >> { %v314_v19 = vsel %vm740_vm12, %v732_v43, %v309_v18 }
 0x143   : >> { %315 = vst [vmem:[%s308_s24] sm:$0x1] %v314_v19 }
 0x144   : > { %p372_p10 = scmp.lt.s32.totalorder (%p686_p3), %s620_s11, 0  ;;  %s373_s30 = ssub.s32 (%p686_p3), 0, %s620_s11  ;;  %v396_v20 = vld [vmem:[%s146_s15] sm:$0x3] (%p686_p3) }
 0x145   : > { %s522_s3 = smin.u32 (%p686_p3), %s620_s11, %s373_s30 }
 0x146   : > { %s375_s4 = sshrl.u32 (%p686_p3), %s522_s3, 3 }
 0x147   : > { %371 = sbr.rel (!%p686_p3) target bundleno = 336 (0x150), region = 99  ;;  %s376_s5 = ssub.s32 (%p686_p3), 0, %s375_s4 }
 0x14a   : > { %v364_v5 = vld [vmem:[%s706_s18] sm:$0xff] }
 0x14b   : > { %365 = vst [vmem:[%s335_s29] sm:$0xff] %v364_v5 }
 0x14c   : > { %s814_s5 = smov (!%p372_p10, %s376_s5), %s375_s4 }
 0x14d   : > { %s523_s6 = sshll.u32 %s814_s5, 1 }
 0x14e   : > { %s379_s17 = scalar_lea.vmem %s803_s2, %s523_s6 }
 0x14f   : > { %397 = vst [vmem:[%s379_s17] sm:$0x3] %v396_v20 }
 0x150 PF: > { %s9_s13 = sadd.s32 1, %s628_s13   ;;  %s807_s9 = smov %s616_s10 }
 0x151   : > { %p6_p11 = scmp.ge.s32.totalorder %s9_s13, 4   ;;  %s808_s10 = smov %s692_s25 }
 0x152   : > { %s809_s11 = smov %s624_s12  ;;  %s810_s12 = smov %s812_s14 }
 0x153   :  { %8 = sbr.rel (!%p6_p11) target bundleno = 3 (0x3), region = 186 }

// kernel: custom-call.58
= control target key start
LH: loop header
LB: loop body
LE: loop exit
PB: predicated region body
PF: predicated region fallthrough
CT: control target
= control target key end

     0   :  { %s243_s6 = smov 0   ;;  %s270_s0 = inlined_call_operand.vmem [shape: f32[2,3,3], index: 0, kind: input, shape index: {}]   ;;  %s271_s1 = inlined_call_operand.vmem [shape: f32[2,3,3], index: 1, kind: output, shape index: {}]  }
   0x1 LB: > { %s205_s7 = sadd.s32 4294967295, %s231_s6   ;;  %p207_p0 = scmp.ge.s32.totalorder %s231_s6, 2  ;;  %s231_s6 = sphi %s243_s6, %s7_s6  }
   0x2   : > { %s23_s8 = sand.u32 (!%p207_p0), 1, %s231_s6   ;;  %s209_s9 = sshll.u32 (!%p207_p0), %s231_s6, 2 }
   0x3   : > { %21 = sbr.rel (%p207_p0) target bundleno = 10 (0xa), region = 16  ;;  %s208_s10 = sshll.u32 (!%p207_p0), %s23_s8, 2 }
   0x4   : > { %s27_s13 = scalar_lea.vmem (!%p207_p0), %s270_s0, %s209_s9  ;;  %s25_s14 = scalar_lea.vmem (!%p207_p0), [#allocation1], %s208_s10 }
   0x8   : > { %v44_v0 = vld [vmem:[%s27_s13] sm:$0xf] }
   0x9   : > { %45 = vst [vmem:[%s25_s14] sm:$0xf] %v44_v0 }
   0xa PF: > { %p210_p1 = scmp.ge.s32.totalorder %s231_s6, 1  ;;  %p62_p2 = scmp.lt.s32.totalorder %s231_s6, 3 }
   0xc   : > { %p63_p3 = pnand %p210_p1, %p62_p2 }
   0xd   : > { %s259_s15 = sand.u32 (!%p63_p3), 1, %s205_s7   ;;  %s214_s19 = sshll.u32 (!%p63_p3), %s205_s7, 2 }
   0xe   : > { %66 = sbr.rel (%p63_p3) target bundleno = 329 (0x149), region = 50  ;;  %s211_s16 = sshll.u32 (!%p63_p3), %s259_s15, 2 }
   0xf   : > { %s75_s17 = scalar_lea.vmem (!%p63_p3), [#allocation1], %s211_s16  ;;  %s79_s18 = scalar_lea.vmem (!%p63_p3), [#allocation3], %s211_s16 }
  0x10   : > { %s133_s22 = scalar_lea.vmem (!%p63_p3), %s271_s1, %s214_s19 }
  0x13   : > { %v85_v1 = vlaneseq  ;;  %v83_v2 = vld [vmem:[%s75_s17] sm:$0xf]  ;;  %vm99_vm1 = vcmask 23552  }
  0x14   : > { %84 = vst [vmem:[#allocation0] sm:$0xf] %v83_v2 }
  0x15   : > { %v86_v3 = vand.u32 127, %v85_v1  ;;  %v88_v4 = vshrl.u32 %v85_v1, 7 }
  0x17   : > { %vm94_vm0 = vcmp.eq.s32.totalorder %v86_v3, 0  ;;  %vm90_vm2 = vcmp.eq.s32.totalorder %v86_v3, %v88_v4  ;;  %vm103_vm3 = vcmp.eq.s32.totalorder %v86_v3, 1  ;;  %vm114_vm4 = vcmp.eq.s32.totalorder %v86_v3, 2 }
  0x1b   : > { %v91_v5 = vld [vmem:[#allocation0] sm:$0xff] }
  0x1c   : > { %v98_v6 = vld [vmem:[#allocation0 + $0x1] ss:$0 sm:$0xff]  ;;  %v95_v7 = vsel %vm94_vm0, %v91_v5, 1.0  ;;  %v109_v11 = vld [vmem:[#allocation0 + $0x2] ss:$0 sm:$0xff] }
  0x1d   : > { %v100_v8 = vsel %vm99_vm1, %v98_v6, 0.0  ;;  %v96_v9 = vsel %vm90_vm2, %v95_v7, 0.0  ;;  %v111_v12 = vsel %vm99_vm1, %v109_v11, 0.0 }
  0x1e   : > { %v104_v10 = vmul.f32 %v100_v8, %v96_v9 }
  0x20   : > { %105 = vadd.xlane.f32.xlu0 %v104_v10 }
  0xa9   : > { %v106_v13 = vpop.xlane.xlu0 %105 }
  0xaa   : > { %v107_v14 = vsel %vm103_vm3, %v106_v13, %v96_v9 }
  0xab   : > { %v115_v15 = vmul.f32 %v111_v12, %v107_v14 }
  0xad   : > { %116 = vadd.xlane.f32.xlu0 %v115_v15 }
 0x136   : > { %v117_v16 = vpop.xlane.xlu0 %116 }
 0x137   : > { %v118_v17 = vsel %vm114_vm4, %v117_v16, %v107_v14 }
 0x138   : > { %119 = vst [vmem:[#allocation2] sm:$0xff] %v118_v17 }
 0x13f   : > { %v124_v18 = vld [vmem:[#allocation2] sm:$0xf] }
 0x140   : > { %127 = vst [vmem:[%s79_s18] sm:$0xf] %v124_v18 }
 0x147   : > { %v150_v19 = vld [vmem:[%s79_s18] sm:$0xf] }
 0x148   : > { %151 = vst [vmem:[%s133_s22] sm:$0xf] %v150_v19 }
 0x149 PF: > { %s7_s6 = sadd.s32 1, %s231_s6  }
 0x14a   : > { %p4_p4 = scmp.ge.s32.totalorder %s7_s6, 4  }
 0x14c   :  { %6 = sbr.rel (!%p4_p4) target bundleno = 1 (0x1), region = 112 }

// kernel: custom-call.50
= control target key start
LH: loop header
LB: loop body
LE: loop exit
PB: predicated region body
PF: predicated region fallthrough
CT: control target
= control target key end

     0   :  { %s6_s0 = inlined_call_operand.hbm [shape: pred[2], index: 0, kind: output, shape index: {}]  }

// kernel: _forward.1
= control target key start
LH: loop header
LB: loop body
LE: loop exit
PB: predicated region body
PF: predicated region fallthrough
CT: control target
= control target key end

     0   :  { %s864_s18 = smov 0   ;;  %s866_s19 = smov 0   ;;  %s935_s0 = inlined_call_operand.vmem [shape: f32[2,3,256], index: 0, kind: input, shape index: {}]   ;;  %s936_s1 = inlined_call_operand.vmem [shape: f32[2,3,256], index: 1, kind: input, shape index: {}]   ;;  %s937_s2 = inlined_call_operand.vmem [shape: f32[2,2,3,3], index: 2, kind: output, shape index: {0}]   ;;  %s938_s3 = inlined_call_operand.vmem [shape: f32[2,2,3,1], index: 3, kind: output, shape index: {1}]   ;;  %s939_s4 = inlined_call_operand.vmem [shape: f32[2,2,3,1], index: 4, kind: output, shape index: {2}]   ;;  %s940_s5 = inlined_call_operand.vmem [shape: f32[2,2,3,1], index: 5, kind: output, shape index: {3}]  }
   0x1   :  { %s868_s20 = smov 0   ;;  %s870_s21 = smov 0  }
   0x2   :  { %s872_s22 = smov 0  }
   0x3 LB: > { %s31_s23 = sadd.s32 1, %s822_s20  ;;  %s35_s24 = sadd.s32 1, %s826_s21  ;;  %s830_s22 = sphi %s872_s22, %s16_s22   ;;  %s826_s21 = sphi %s870_s21, %s944_s21   ;;  %s822_s20 = sphi %s868_s20, %s943_s20   ;;  %s818_s19 = sphi %s866_s19, %s942_s19   ;;  %s814_s18 = sphi %s864_s18, %s941_s18  }
   0x4   : > { %p33_p0 = scmp.ge.s32.totalorder %s31_s23, 2  ;;  %p728_p1 = scmp.ge.s32.totalorder %s830_s22, 1 }
   0x5   : > { %p249_p2 = scmp.lt.s32.totalorder %s830_s22, 5 }
   0x6   : > { %s946_s23 = smov (%p33_p0, %s31_s23), 0  ;;  %s948_s24 = smov (!%p33_p0, %s35_s24), %s826_s21 }
   0x7   : > { %p250_p3 = pnand %p728_p1, %p249_p2  ;;  %p37_p4 = scmp.ge.s32.totalorder %s948_s24, 2 }
   0x8   : > { %p318_p5 = scmp.lt.s32.totalorder (!%p250_p3), %s814_s18, 1  ;;  %p320_p6 = scmp.lt.s32.totalorder (!%p250_p3), %s818_s19, 1 }
   0x9   : > { %s950_s24 = smov (%p37_p4, %s948_s24), 0  ;;  %253 = sbr.rel (%p250_p3) target bundleno = 219 (0xdb), region = 28 }
   0xe   : > { %v832_v0 = vmov 0.0   ;;  %vm833_vm0 = vmmov 0   ;;  %s952_s18 = smov (!%p318_p5, %s814_s18), 1  ;;  %s954_s19 = smov (!%p320_p6, %s818_s19), 1  ;;  %vm375_vm1 = vcmask 2048   ;;  %vm456_vm2 = vcmask 1042432  }
   0xf   : > { %745 = vmatprep.subr.mxu0 %v832_v0  ;;  %747 = vmatprep.mubr.msk.f32.mxu0 %vm833_vm0, %v832_v0  ;;  %s729_s25 = sshll.u32 %s952_s18, 1  ;;  %s733_s27 = sshll.u32 %s954_s19, 1  ;;  %vm373_vm3 = vcmask 18432  }
  0x10   : > { %s323_s26 = sadd.s32 %s729_s25, %s954_s19  ;;  %s342_s29 = sadd.s32 %s733_s27, %s952_s18 }
  0x11   : > { %s730_s28 = sshll.u32 %s323_s26, 2  ;;  %s734_s8 = sshll.u32 %s342_s29, 2 }
  0x12   : > { %s335_s7 = scalar_lea.vmem %s936_s1, %s730_s28  ;;  %s325_s11 = scalar_lea.vmem %s935_s0, %s730_s28 }
  0x13   : > { %v380_v1 = vld [vmem:[%s335_s7] sm:$0x7]  ;;  %s352_s14 = scalar_lea.vmem %s938_s3, %s734_s8  ;;  %s368_s17 = scalar_lea.vmem %s940_s5, %s734_s8 }
  0x14   : > { %746 = vmatpush3.xpose.msra.mxu0 %v380_v1  ;;  %v379_v2 = vld [vmem:[%s325_s11] sm:$0x7]  ;;  %376 = vst.msk [vmem:[%s352_s14] sm:$0x7] %vm375_vm1, %v832_v0  ;;  %v464_v6 = vsel %vm456_vm2, %v380_v1, 0.0  ;;  %s360_s25 = scalar_lea.vmem %s939_s4, %s734_s8  ;;  %s344_s28 = scalar_lea.vmem %s937_s2, %s734_s8 }
  0x15   : > { %v457_v3 = vsel %vm456_vm2, %v379_v2, 0.0  ;;  %v470_v4 = vmul.f32 %v379_v2, %v379_v2  ;;  %378 = vst.msk [vmem:[%s368_s17] sm:$0x7] %vm375_vm1, %v832_v0  ;;  %377 = vst.msk [vmem:[%s360_s25] sm:$0x7] %vm375_vm1, %v832_v0 }
  0x16   : > { %458 = vadd.xlane.f32.xlu0 %v457_v3  ;;  %374 = vst.msk [vmem:[%s344_s28] sm:$0x7] %vm373_vm3, %v832_v0 }
  0x17   : > { %748 = vmatmul.mubr.f32.vlgmr.msra.gmra.mxu0 %v379_v2  ;;  %v471_v5 = vsel %vm456_vm2, %v470_v4, 0.0 }
  0x18   : > { %472 = vadd.xlane.f32.xlu1 %v471_v5 }
  0x1a   : > { %465 = vadd.xlane.f32.xlu0 %v464_v6 }
  0x1b   : > { %v455_v7 = vld [vmem:[%s352_s14] sm:$0x7] }
  0x1c   : > { %v469_v9 = vld [vmem:[%s368_s17] sm:$0x7] }
  0x1d   : > { %v463_v12 = vld [vmem:[%s360_s25] sm:$0x7] }
  0x1e   : > { %v381_v16 = vld [vmem:[%s344_s28] sm:$0x7] }
  0x9f   : > { %v459_v8 = vpop.xlane.xlu0 %458 }
  0xa0   : > { %v460_v10 = vadd.f32 %v459_v8, %v455_v7 }
  0xa1   : > { %v473_v11 = vpop.xlane.xlu1 %472 }
  0xa2   : > { %462 = vst.msk [vmem:[%s352_s14] sm:$0x7] %vm375_vm1, %v460_v10  ;;  %v474_v13 = vadd.f32 %v473_v11, %v469_v9 }
  0xa3   : > { %v466_v14 = vpop.xlane.xlu0 %465 }
  0xa4   : > { %475 = vst.msk [vmem:[%s368_s17] sm:$0x7] %vm375_vm1, %v474_v13  ;;  %v467_v15 = vadd.f32 %v466_v14, %v463_v12 }
  0xa6   : > { %468 = vst.msk [vmem:[%s360_s25] sm:$0x7] %vm375_vm1, %v467_v15 }
  0xd7   : > { %v448_v17 = vpop.f32.mrf.mxu0 }
  0xd8   : > { %v452_v18 = vadd.f32 %v448_v17, %v381_v16 }
  0xd9   : > { %v749_v19 = vpop.f32.mrf.mxu0 }
  0xda   : > { %454 = vst.msk [vmem:[%s344_s28] sm:$0x7] %vm373_vm3, %v452_v18 }
  0xdb PF: > { %s16_s22 = sadd.s32 1, %s830_s22   ;;  %s941_s18 = smov %s822_s20 }
  0xdc   : > { %p13_p7 = scmp.ge.s32.totalorder %s16_s22, 6   ;;  %s942_s19 = smov %s826_s21 }
  0xdd   : > { %s943_s20 = smov %s946_s23  ;;  %s944_s21 = smov %s950_s24 }
  0xde   :  { %15 = sbr.rel (!%p13_p7) target bundleno = 3 (0x3), region = 101 }

// kernel: custom-call.55
= control target key start
LH: loop header
LB: loop body
LE: loop exit
PB: predicated region body
PF: predicated region fallthrough
CT: control target
= control target key end

     0   :  { %s350_s6 = smov 0   ;;  %s352_s7 = smov 0   ;;  %s397_s0 = inlined_call_operand.vmem [shape: f32[2,3,3], index: 0, kind: input, shape index: {}]   ;;  %s398_s1 = inlined_call_operand.vmem [shape: f32[2,3,3], index: 1, kind: output, shape index: {}]  }
   0x1   :  { %s354_s8 = smov 0  }
   0x2 LB: > { %s272_s9 = sadd.s32 4294967295, %s337_s8   ;;  %s26_s10 = sadd.s32 1, %s333_s7  ;;  %s337_s8 = sphi %s354_s8, %s7_s8   ;;  %s333_s7 = sphi %s352_s7, %s400_s7   ;;  %s329_s6 = sphi %s350_s6, %s399_s6  }
   0x3   : > { %p28_p0 = scmp.ge.s32.totalorder %s26_s10, 2  ;;  %p274_p1 = scmp.ge.s32.totalorder %s337_s8, 2 }
   0x4   : > { %s42_s11 = sand.u32 (!%p274_p1), 1, %s337_s8   ;;  %s276_s12 = sshll.u32 (!%p274_p1), %s333_s7, 2 }
   0x5   : > { %s402_s10 = smov (%p28_p0, %s26_s10), 0  ;;  %40 = sbr.rel (%p274_p1) target bundleno = 12 (0xc), region = 16 }
   0x6   : > { %s275_s13 = sshll.u32 (!%p274_p1), %s42_s11, 2  ;;  %s48_s16 = scalar_lea.vmem (!%p274_p1), %s397_s0, %s276_s12 }
   0x7   : > { %s44_s17 = scalar_lea.vmem (!%p274_p1), [#allocation1], %s275_s13 }
   0xa   : > { %v65_v0 = vld [vmem:[%s48_s16] sm:$0xf] }
   0xb   : > { %66 = vst [vmem:[%s44_s17] sm:$0xf] %v65_v0 }
   0xc PF: > { %p277_p2 = scmp.ge.s32.totalorder %s337_s8, 1  ;;  %p83_p3 = scmp.lt.s32.totalorder %s337_s8, 3 }
   0xe   : > { %p84_p4 = pnand %p277_p2, %p83_p3 }
   0xf   : > { %s377_s18 = sand.u32 (!%p84_p4), 1, %s272_s9   ;;  %s281_s22 = sshll.u32 (!%p84_p4), %s329_s6, 2 }
  0x10   : > { %87 = sbr.rel (%p84_p4) target bundleno = 544 (0x220), region = 50  ;;  %s278_s19 = sshll.u32 (!%p84_p4), %s377_s18, 2 }
  0x11   : > { %s96_s20 = scalar_lea.vmem (!%p84_p4), [#allocation1], %s278_s19  ;;  %s100_s21 = scalar_lea.vmem (!%p84_p4), [#allocation3], %s278_s19 }
  0x12   : > { %s184_s25 = scalar_lea.vmem (!%p84_p4), %s398_s1, %s281_s22 }
  0x15   : > { %v339_v1 = vmov 0.0   ;;  %v104_v5 = vld [vmem:[%s96_s20] sm:$0xf]  ;;  %vm107_vm0 = vcmask 7168   ;;  %vm125_vm1 = vcmask 15368   ;;  %vm142_vm2 = vcmask 1047553  }
  0x16   : > { %106 = vst [vmem:[#allocation2] sm:$0xff] %v339_v1  ;;  %105 = vst [vmem:[#allocation0] sm:$0xf] %v104_v5  ;;  %vm147_vm4 = vcmask 23568   ;;  %vm164_vm5 = vcmask 1047554  }
  0x17   : > { %vm143_vm3 = vmand %vm125_vm1, %vm142_vm2 }
  0x18   : > { %vm165_vm6 = vmand %vm147_vm4, %vm164_vm5 }
  0x1d   : > { %v108_v2 = vld [vmem:[#allocation2] ss:$0 sm:$0xff]  ;;  %v109_v6 = vld [vmem:[#allocation0] ss:$0 sm:$0xff]  ;;  %v129_v18 = vld [vmem:[#allocation0 + $0x1] ss:$0 sm:$0xff] }
  0x1e   : > { %v110_v3 = vmul.f32 %v108_v2, %v108_v2  ;;  %v117_v4 = vmul.f32 0.0, %v108_v2  ;;  %v115_v10 = vld [vmem:[#allocation0] sm:$0xff] }
  0x1f   : > { %v151_v30 = vld [vmem:[#allocation0 + $0x2] ss:$0 sm:$0xff] }
  0x20   : > { %111 = vadd.xlane.f32.xlu0 %v110_v3 }
  0x24   : > { %118 = vadd.xlane.f32.xlu0 %v117_v4 }
  0xa9   : > { %v112_v7 = vpop.xlane.xlu0 %111 }
  0xaa   : > { %v113_v8 = vsub.f32 %v109_v6, %v112_v7 }
  0xac   : > { %309 = vrsqrt.f32 %v113_v8 }
  0xad   : > { %v119_v9 = vpop.xlane.xlu0 %118 }
  0xae   : > { %v120_v11 = vsub.f32 %v115_v10, %v119_v9 }
  0xb9   : > { %v310_v12 = vpop.eup %309 }
  0xba   : > { %v121_v13 = vmul.f32 %v310_v12, %v120_v11 }
  0xbc   : > { %v122_v14 = vsel %vm107_vm0, %v121_v13, 0.0 }
  0xbd   : > { %124 = vst [vmem:[#allocation2] sm:$0xff] %v122_v14 }
  0xc4   : > { %v127_v15 = vld [vmem:[#allocation2 + $0x1] ss:$0 sm:$0xff] }
  0xc5   : > { %v130_v16 = vmul.f32 %v127_v15, %v127_v15  ;;  %v137_v17 = vmul.f32 %v127_v15, %v122_v14 }
  0xc7   : > { %131 = vadd.xlane.f32.xlu1 %v130_v16 }
  0xcb   : > { %138 = vadd.xlane.f32.xlu1 %v137_v17 }
 0x150   : > { %v132_v19 = vpop.xlane.xlu1 %131 }
 0x151   : > { %v133_v20 = vsub.f32 %v129_v18, %v132_v19 }
 0x153   : > { %311 = vrsqrt.f32 %v133_v20 }
 0x154   : > { %v139_v21 = vpop.xlane.xlu1 %138 }
 0x155   : > { %v140_v22 = vsub.f32 %v115_v10, %v139_v21 }
 0x160   : > { %v312_v23 = vpop.eup %311 }
 0x161   : > { %v141_v24 = vmul.f32 %v312_v23, %v140_v22 }
 0x163   : > { %v144_v25 = vsel %vm143_vm3, %v141_v24, 0.0 }
 0x164   : > { %v145_v26 = vadd.f32 %v144_v25, %v122_v14 }
 0x166   : > { %146 = vst [vmem:[#allocation2] sm:$0xff] %v145_v26 }
 0x16d   : > { %v149_v27 = vld [vmem:[#allocation2 + $0x2] ss:$0 sm:$0xff] }
 0x16e   : > { %v159_v28 = vmul.f32 %v149_v27, %v145_v26  ;;  %v152_v29 = vmul.f32 %v149_v27, %v149_v27 }
 0x170   : > { %160 = vadd.xlane.f32.xlu1 %v159_v28  ;;  %153 = vadd.xlane.f32.xlu0 %v152_v29 }
 0x1f9   : > { %v154_v31 = vpop.xlane.xlu0 %153  ;;  %v161_v33 = vpop.xlane.xlu1 %160 }
 0x1fa   : > { %v155_v32 = vsub.f32 %v151_v30, %v154_v31  ;;  %v162_v34 = vsub.f32 %v115_v10, %v161_v33 }
 0x1fc   : > { %313 = vrsqrt.f32 %v155_v32 }
 0x209   : > { %v314_v35 = vpop.eup %313 }
 0x20a   : > { %v163_v36 = vmul.f32 %v314_v35, %v162_v34 }
 0x20c   : > { %v166_v37 = vsel %vm165_vm6, %v163_v36, 0.0 }
 0x20d   : > { %v167_v38 = vadd.f32 %v166_v37, %v145_v26 }
 0x20f   : > { %168 = vst [vmem:[#allocation2] sm:$0xff] %v167_v38 }
 0x216   : > { %v173_v39 = vld [vmem:[#allocation2] sm:$0xf] }
 0x217   : > { %176 = vst [vmem:[%s100_s21] sm:$0xf] %v173_v39 }
 0x21e   : > { %v201_v40 = vld [vmem:[%s100_s21] sm:$0xf] }
 0x21f   : > { %202 = vst [vmem:[%s184_s25] sm:$0xf] %v201_v40 }
 0x220 PF: > { %s7_s8 = sadd.s32 1, %s337_s8   ;;  %s399_s6 = smov %s333_s7 }
 0x221   : > { %p4_p5 = scmp.ge.s32.totalorder %s7_s8, 4   ;;  %s400_s7 = smov %s402_s10 }
 0x223   :  { %6 = sbr.rel (!%p4_p5) target bundleno = 2 (0x2), region = 114 }

// kernel: custom-call.56
= control target key start
LH: loop header
LB: loop body
LE: loop exit
PB: predicated region body
PF: predicated region fallthrough
CT: control target
= control target key end

     0   :  { %s350_s6 = smov 0   ;;  %s352_s7 = smov 0   ;;  %s397_s0 = inlined_call_operand.vmem [shape: f32[2,1,3,3], index: 0, kind: input, shape index: {}]   ;;  %s398_s1 = inlined_call_operand.vmem [shape: f32[2,1,3,3], index: 1, kind: output, shape index: {}]  }
   0x1   :  { %s354_s8 = smov 0  }
   0x2 LB: > { %s276_s9 = sadd.s32 4294967295, %s337_s8   ;;  %s33_s10 = sadd.s32 1, %s333_s7  ;;  %s337_s8 = sphi %s354_s8, %s7_s8   ;;  %s333_s7 = sphi %s352_s7, %s400_s7   ;;  %s329_s6 = sphi %s350_s6, %s399_s6  }
   0x3   : > { %p35_p0 = scmp.ge.s32.totalorder %s33_s10, 2  ;;  %p278_p1 = scmp.ge.s32.totalorder %s337_s8, 2 }
   0x4   : > { %s49_s11 = sand.u32 (!%p278_p1), 1, %s337_s8   ;;  %s280_s12 = sshll.u32 (!%p278_p1), %s333_s7, 2 }
   0x5   : > { %s402_s10 = smov (%p35_p0, %s33_s10), 0  ;;  %47 = sbr.rel (%p278_p1) target bundleno = 12 (0xc), region = 16 }
   0x6   : > { %s279_s13 = sshll.u32 (!%p278_p1), %s49_s11, 2  ;;  %s56_s16 = scalar_lea.vmem (!%p278_p1), %s397_s0, %s280_s12 }
   0x7   : > { %s51_s17 = scalar_lea.vmem (!%p278_p1), [#allocation1], %s279_s13 }
   0xa   : > { %v73_v0 = vld [vmem:[%s56_s16] sm:$0xf] }
   0xb   : > { %74 = vst [vmem:[%s51_s17] sm:$0xf] %v73_v0 }
   0xc PF: > { %p281_p2 = scmp.ge.s32.totalorder %s337_s8, 1  ;;  %p91_p3 = scmp.lt.s32.totalorder %s337_s8, 3 }
   0xe   : > { %p92_p4 = pnand %p281_p2, %p91_p3 }
  0x10   : > { %95 = sbr.rel (%p92_p4) target bundleno = 500 (0x1f4), region = 50 }
  0x15   : > { %s377_s18 = sand.u32 1, %s276_s9   ;;  %v114_v1 = vlaneseq  ;;  %v339_v11 = vmov -1.0   ;;  %s285_s22 = sshll.u32 %s329_s6, 2 }
  0x16   : > { %s282_s19 = sshll.u32 %s377_s18, 2  ;;  %s183_s25 = scalar_lea.vmem %s398_s1, %s285_s22 }
  0x17   : > { %s104_s20 = scalar_lea.vmem [#allocation1], %s282_s19  ;;  %v115_v3 = vand.u32 127, %v114_v1  ;;  %v118_v4 = vshrl.u32 %v114_v1, 7  ;;  %s108_s21 = scalar_lea.vmem [#allocation3], %s282_s19 }
  0x18   : > { %v112_v2 = vld [vmem:[%s104_s20] sm:$0xf] }
  0x19   : > { %113 = vst [vmem:[#allocation0] sm:$0xf] %v112_v2  ;;  %vm116_vm0 = vcmp.lt.s32.totalorder %v115_v3, 3  ;;  %vm125_vm1 = vcmp.ge.s32.totalorder %v118_v4, %v115_v3  ;;  %vm120_vm2 = vcmp.eq.s32.totalorder %v118_v4, %v115_v3  ;;  %vm139_vm4 = vcmp.eq.s32.totalorder %v115_v3, 0 }
  0x1a   : > { %vm126_vm3 = vmand %vm125_vm1, %vm116_vm0  ;;  %vm136_vm5 = vcmp.eq.s32.totalorder %v115_v3, %v118_v4  ;;  %v140_v12 = vsel %vm139_vm4, 1.0, %v339_v11  ;;  %vm147_vm6 = vcmp.eq.s32.totalorder %v115_v3, 1  ;;  %vm157_vm7 = vcmp.eq.s32.totalorder %v115_v3, 2 }
  0x1b   : > { %v141_v13 = vsel %vm136_vm5, %v140_v12, 0.0 }
  0x20   : > { %v121_v5 = vld [vmem:[#allocation0] sm:$0xff] }
  0x21   : > { %v122_v6 = vsel %vm120_vm2, %v121_v5, 0.0  ;;  %v127_v7 = vsel %vm126_vm3, %v121_v5, 0.0 }
  0x22   : > { %123 = vadd.xlane.f32.xlu0 %v122_v6 }
  0xab   : > { %v124_v8 = vpop.xlane.xlu0 %123 }
  0xac   : > { %313 = vrcp.f32 %v124_v8  ;;  %vm164_vm8 = vweird.f32 %v124_v8 }
  0xb9   : > { %v314_v9 = vpop.eup %313 }
  0xba   : > { %v129_v10 = vmul.f32 %v314_v9, %v127_v7 }
  0xbc   : > { %130 = vst [vmem:[#allocation4] sm:$0xff] %v129_v10 }
  0xc3   : > { %v143_v14 = vld [vmem:[#allocation4 + $0x1] ss:$0 sm:$0xff]  ;;  %v153_v17 = vld [vmem:[#allocation4 + $0x2] ss:$0 sm:$0xff] }
  0xc4   : > { %v144_v15 = vxor.u32 2147483648, %v143_v14  ;;  %v154_v19 = vxor.u32 2147483648, %v153_v17 }
  0xc6   : > { %v148_v16 = vmul.f32 %v144_v15, %v141_v13 }
  0xc8   : > { %149 = vadd.xlane.f32.xlu0 %v148_v16 }
 0x151   : > { %v150_v18 = vpop.xlane.xlu0 %149 }
 0x152   : > { %v151_v20 = vsel %vm147_vm6, %v150_v18, %v141_v13 }
 0x153   : > { %v158_v21 = vmul.f32 %v154_v19, %v151_v20 }
 0x155   : > { %159 = vadd.xlane.f32.xlu1 %v158_v21 }
 0x1de   : > { %v160_v22 = vpop.xlane.xlu1 %159 }
 0x1df   : > { %v161_v23 = vsel %vm157_vm7, %v160_v22, %v151_v20 }
 0x1e0   : > { %v163_v24 = vmul.f32 %v314_v9, %v161_v23 }
 0x1e2   : > { %v165_v25 = vsel %vm164_vm8, %v161_v23, %v163_v24 }
 0x1e3   : > { %166 = vst [vmem:[#allocation2] sm:$0xff] %v165_v25 }
 0x1ea   : > { %v171_v26 = vld [vmem:[#allocation2] sm:$0xf] }
 0x1eb   : > { %174 = vst [vmem:[%s108_s21] sm:$0xf] %v171_v26 }
 0x1f2   : > { %v200_v27 = vld [vmem:[%s108_s21] sm:$0xf] }
 0x1f3   : > { %201 = vst [vmem:[%s183_s25] sm:$0xf] %v200_v27 }
 0x1f4 PF: > { %s7_s8 = sadd.s32 1, %s337_s8   ;;  %s399_s6 = smov %s333_s7 }
 0x1f5   : > { %p4_p5 = scmp.ge.s32.totalorder %s7_s8, 4   ;;  %s400_s7 = smov %s402_s10 }
 0x1f7   :  { %6 = sbr.rel (!%p4_p5) target bundleno = 2 (0x2), region = 112 }

// kernel: custom-call.22
= control target key start
LH: loop header
LB: loop body
LE: loop exit
PB: predicated region body
PF: predicated region fallthrough
CT: control target
= control target key end

     0   :  { %s1740_s30 = smov 0   ;;  %s1742_s10 = smov 0   ;;  %s2066_s0 = inlined_call_operand.vmem [shape: f32[2,2,2], index: 0, kind: input, shape index: {}]   ;;  %s2067_s1 = inlined_call_operand.vmem [shape: f32[2,2,2], index: 1, kind: input, shape index: {}]   ;;  %s2068_s2 = inlined_call_operand.vmem [shape: f32[2,2,2], index: 2, kind: input, shape index: {}]   ;;  %s2069_s3 = inlined_call_operand.vmem [shape: f32[2,2,2], index: 3, kind: input, shape index: {}]   ;;  %s2070_s4 = inlined_call_operand.vmem [shape: f32[2,2], index: 4, kind: output, shape index: {0}]   ;;  %s2071_s5 = inlined_call_operand.vmem [shape: f32[2,2], index: 5, kind: output, shape index: {1}]   ;;  %s2072_s6 = inlined_call_operand.vmem [shape: f32[2,2,2], index: 6, kind: output, shape index: {2}]   ;;  %s2073_s7 = inlined_call_operand.vmem [shape: f32[2,2,2], index: 7, kind: output, shape index: {3}]   ;;  %s2074_s8 = inlined_call_operand.vmem [shape: f32[2,2,2], index: 8, kind: output, shape index: {4}]   ;;  %s2075_s9 = inlined_call_operand.vmem [shape: f32[2,2,2], index: 9, kind: output, shape index: {5}]  }
   0x1   :  { %s1744_s11 = smov 0  }
   0x2 LB: > { %s1756_s12 = sadd.s32 4294967295, %s1677_s11   ;;  %s1759_s13 = sadd.s32 1, %s1677_s11   ;;  %s1677_s11 = sphi %s1744_s11, %s2094_s11   ;;  %s1673_s10 = sphi %s1742_s10, %s2093_s10   ;;  %s1669_s30 = sphi %s1740_s30, %s2092_s30  }
   0x3   : > { %s20_s14 = sshrl.u32 %s1677_s11, 3  ;;  %s21_s15 = sshrl.u32 %s1759_s13, 3 }
   0x4   : > { %s22_s16 = ssub.s32 %s20_s14, %s21_s15  ;;  %s25_s17 = sadd.s32 1, %s1673_s10 }
   0x5   : > { %p23_p0 = scmp.eq.s32.totalorder %s22_s16, 0  ;;  %p35_p1 = scmp.ne.s32.totalorder %s1673_s10, %s1669_s30 }
   0x6   : > { %p36_p2 = scmp.eq.s32.totalorder %s1756_s12, 1  ;;  %p1538_p4 = scmp.ge.s32.totalorder %s1677_s11, 2 }
   0x7   : > { %s1768_s18 = scalar_select %p23_p0, %s1673_s10, %s25_s17  }
   0x8   : > { %p1770_p3 = por %p36_p2, %p35_p1  ;;  %86 = sbr.rel (%p1538_p4) target bundleno = 18 (0x12), region = 16 }
   0x9   : > { %2076 = sst [smem:[#allocation33_spill]] %s1768_s18  ;;  %s88_s20 = sand.u32 (!%p1538_p4), 1, %s1677_s11  }
   0xa   : > { %s1540_s21 = sshll.u32 (!%p1538_p4), %s1677_s11, 1  ;;  %s1539_s22 = sshll.u32 (!%p1538_p4), %s88_s20, 1 }
   0xb   : > { %s92_s25 = scalar_lea.vmem (!%p1538_p4), %s2066_s0, %s1540_s21  ;;  %s90_s26 = scalar_lea.vmem (!%p1538_p4), [#allocation1], %s1539_s22 }
   0xc   : > { %s131_s29 = scalar_lea.vmem (!%p1538_p4), %s2067_s1, %s1540_s21  ;;  %s170_s16 = scalar_lea.vmem (!%p1538_p4), %s2068_s2, %s1540_s21 }
   0xd   : > { %v109_v0 = vld [vmem:[%s92_s25] sm:$0x3]  ;;  %s129_s17 = scalar_lea.vmem [#allocation3], %s1539_s22  ;;  %s209_s23 = scalar_lea.vmem %s2069_s3, %s1540_s21 }
   0xe   : > { %110 = vst [vmem:[%s90_s26] sm:$0x3] %v109_v0  ;;  %v148_v1 = vld [vmem:[%s131_s29] sm:$0x3]  ;;  %s168_s24 = scalar_lea.vmem [#allocation5], %s1539_s22  ;;  %s207_s25 = scalar_lea.vmem [#allocation7], %s1539_s22 }
   0xf   : > { %149 = vst [vmem:[%s129_s17] sm:$0x3] %v148_v1  ;;  %v187_v2 = vld [vmem:[%s170_s16] sm:$0x3] }
  0x10   : > { %188 = vst [vmem:[%s168_s24] sm:$0x3] %v187_v2  ;;  %v226_v3 = vld [vmem:[%s209_s23] sm:$0x3] }
  0x11   : > { %227 = vst [vmem:[%s207_s25] sm:$0x3] %v226_v3 }
  0x12 PF: > { %p1547_p5 = scmp.ge.s32.totalorder %s1677_s11, 1  ;;  %p244_p6 = scmp.lt.s32.totalorder %s1677_s11, 3 }
  0x14   : > { %p245_p7 = pnand %p1547_p5, %p244_p6 }
  0x16   : > { %248 = sbr.rel (%p245_p7) target bundleno = 994 (0x3e2), region = 140 }
  0x1b   : > { %s267_s26 = sand.u32 1, %s1756_s12   ;;  %s285_s27 = sand.u32 1, %s1669_s30   ;;  %v349_v4 = vlaneseq  ;;  %v1687_v5 = vmov 0.0  }
  0x1c   : > { %s1793_s28 = sshll.u32 %s267_s26, 1  ;;  %s1795_s18 = sshll.u32 %s285_s27, 1  ;;  %344 = vst [vmem:[#allocation12] sm:$0xff] %v1687_v5  ;;  %345 = vst [vmem:[#allocation14] sm:$0xff] %v1687_v5 }
  0x1d   : > { %346 = vst [vmem:[#allocation16] sm:$0xff] %v1687_v5  ;;  %347 = vst [vmem:[#allocation18] sm:$0xff] %v1687_v5  ;;  %v1797_v6 = vand.u32 127, %v349_v4  ;;  %v1799_v7 = vshrl.u32 %v349_v4, 7  ;;  %s269_s11 = scalar_lea.vmem [#allocation1], %s1793_s28  ;;  %s273_s30 = scalar_lea.vmem [#allocation3], %s1793_s28 }
  0x1e   : > { %v313_v8 = vld [vmem:[%s269_s11] sm:$0x3]  ;;  %v318_v9 = vld [vmem:[%s273_s30] sm:$0x3]  ;;  %s277_s21 = scalar_lea.vmem [#allocation5], %s1793_s28  ;;  %s281_s22 = scalar_lea.vmem [#allocation7], %s1793_s28 }
  0x1f   : > { %314 = vst [vmem:[#allocation0] sm:$0x3] %v313_v8  ;;  %319 = vst [vmem:[#allocation2] sm:$0x3] %v318_v9  ;;  %v323_v10 = vld [vmem:[%s277_s21] sm:$0x3]  ;;  %v351_v6 = vmov %v1797_v6  ;;  %v354_v7 = vmov %v1799_v7 }
  0x20   : > { %v328_v11 = vld [vmem:[%s281_s22] sm:$0x3]  ;;  %324 = vst [vmem:[#allocation4] sm:$0x3] %v323_v10  ;;  %v364_v6 = vmov %v1797_v6  ;;  %v367_v7 = vmov %v1799_v7  ;;  %s332_s29 = smov [#allocation20]  ;;  %s335_s14 = smov [#allocation21]  ;;  %vm358_vm0 = vcmp.eq.s32.totalorder %v354_v7, %v351_v6 }
  0x21   : > { %329 = vst [vmem:[#allocation6] sm:$0x3] %v328_v11  ;;  %vm371_vm1 = vcmp.eq.s32.totalorder %v367_v7, %v364_v6  ;;  %s348_s15 = smov [#allocation12]  ;;  %s361_s16 = smov [#allocation18]  ;;  %vm1427_vm2 = vcmp.lt.s32.totalorder %v1797_v6, 2  ;;  %v1419_v6 = vmov %v1797_v6  ;;  %v1422_v7 = vmov %v1799_v7 }
  0x22   : > { %s338_s17 = smov [#allocation22]  ;;  %s341_s20 = smov [#allocation23]  ;;  %vm1432_vm3 = vcmp.eq.s32.totalorder %v1422_v7, %v1419_v6  ;;  %v1470_v6 = vmov %v1797_v6  ;;  %v1439_v7 = vmov %v1799_v7 }
  0x23   : > { %v355_v12 = vld [vmem:[%s348_s15] sm:$0x3]  ;;  %s1423_s30 = smov [#allocation20]  ;;  %s1440_s21 = smov [#allocation21]  ;;  %v1436_v6 = vmov %v1797_v6  ;;  %v1473_v7 = vmov %v1799_v7 }
  0x24   : > { %v368_v13 = vld [vmem:[%s361_s16] sm:$0x3]  ;;  %v359_v16 = vsel %vm358_vm0, 1.0, %v355_v12  ;;  %s1457_s22 = smov [#allocation22]  ;;  %v1453_v6 = vmov %v1797_v6  ;;  %v1456_v7 = vmov %v1799_v7  ;;  %vm1483_vm4 = vcmp.eq.s32.totalorder %v1473_v7, %v1470_v6 }
  0x25   : > { %v372_v17 = vsel %vm371_vm1, 1.0, %v368_v13  ;;  %360 = vst [vmem:[%s348_s15] sm:$0x3] %v359_v16 }
  0x26   : > { %v333_v14 = vld [vmem:[#allocation0] sm:$0xff]  ;;  %v336_v15 = vld [vmem:[#allocation2] sm:$0xff]  ;;  %373 = vst [vmem:[%s361_s16] sm:$0x3] %v372_v17 }
  0x27   : > { %334 = vst [vmem:[%s332_s29] sm:$0xff] %v333_v14  ;;  %337 = vst [vmem:[%s335_s14] sm:$0xff] %v336_v15  ;;  %v339_v18 = vld [vmem:[#allocation4] sm:$0xff]  ;;  %s1474_s29 = smov [#allocation23] }
  0x28   : > { %v342_v19 = vld [vmem:[#allocation6] sm:$0xff]  ;;  %340 = vst [vmem:[%s338_s17] sm:$0xff] %v339_v18 }
  0x29   : > { %343 = vst [vmem:[%s341_s20] sm:$0xff] %v342_v19 }
  0x2e   : > { %v1429_v20 = vld [vmem:[%s1423_s30] sm:$0x3] }
  0x2f   : > { %v1446_v21 = vld [vmem:[%s1440_s21] sm:$0x3]  ;;  %v1430_v22 = vsel %vm1427_vm2, %v1429_v20, 0.0 }
  0x30   : > { %v1447_v23 = vsel %vm1427_vm2, %v1446_v21, 0.0  ;;  %v1463_v24 = vld [vmem:[%s1457_s22] sm:$0x3]  ;;  %v1431_v26 = vmul.f32 %v1430_v22, %v1430_v22 }
  0x31   : > { %v1480_v25 = vld [vmem:[%s1474_s29] sm:$0x3]  ;;  %v1448_v27 = vmul.f32 %v1447_v23, %v1447_v23  ;;  %v1464_v28 = vsel %vm1427_vm2, %v1463_v24, 0.0 }
  0x32   : > { %v1481_v29 = vsel %vm1427_vm2, %v1480_v25, 0.0  ;;  %v1465_v30 = vmul.f32 %v1464_v28, %v1464_v28  ;;  %v1433_v33 = vsel %vm1432_vm3, 0.0, %v1431_v26 }
  0x33   : > { %v1450_v31 = vadd.f32 %v1448_v27, %v1431_v26  ;;  %v1482_v32 = vmul.f32 %v1481_v29, %v1481_v29  ;;  %v1449_v34 = vadd.f32 %v1448_v27, %v1433_v33 }
  0x35   : > { %v1467_v35 = vadd.f32 %v1465_v30, %v1450_v31  ;;  %v1466_v36 = vadd.f32 %v1465_v30, %v1449_v34  ;;  %v1484_v37 = vsel %vm1483_vm4, 0.0, %v1482_v32 }
  0x37   : > { %v1486_v38 = vadd.f32 %v1482_v32, %v1467_v35  ;;  %v1485_v39 = vadd.f32 %v1484_v37, %v1466_v36 }
  0x39   : > { %1487 = vadd.xlane.f32.xlu0 %v1486_v38 }
  0x3d   : > { %1495 = vadd.xlane.f32.xlu0 %v1485_v39 }
  0xc2   : > { %v1488_v40 = vpop.xlane.xlu0 %1487 }
  0xc3   : > { %v1489_v41 = vrot.slane %v1488_v40, 4 }
  0xc5   : > { %v1490_v42 = vadd.f32 %v1489_v41, %v1488_v40 }
  0xc6   : > { %v1496_v43 = vpop.xlane.xlu0 %1495 }
  0xc7   : > { %v1491_v44 = vrot.slane %v1490_v42, 2  ;;  %v1497_v45 = vrot.slane %v1496_v43, 4 }
  0xc9   : > { %v1498_v46 = vadd.f32 %v1497_v45, %v1496_v43  ;;  %v1492_v47 = vadd.f32 %v1491_v44, %v1490_v42 }
  0xcb   : > { %v1499_v48 = vrot.slane %v1498_v46, 2  ;;  %v1493_v50 = vrot.slane %v1492_v47, 1 }
  0xcd   : > { %v1500_v49 = vadd.f32 %v1499_v48, %v1498_v46  ;;  %v1494_v53 = vadd.f32 %v1493_v50, %v1492_v47 }
  0xcf   : > { %v1501_v51 = vrot.slane %v1500_v49, 1 }
  0xd1   : > { %v1502_v52 = vadd.f32 %v1501_v51, %v1500_v49 }
  0xd3   : > { %1588 = vpush %v1502_v52 }
  0xd4   : > { %1590 = vpush %v1494_v53 }
 0x104   : > { %s1589_s14 = spop %1588 }
 0x105   : > { %s1591_s15 = spop %1590 }
 0x106   : > { %s1505_s16 = smul.f32 1e-10, %s1591_s15 }
 0x108   : > { %p1506_p8 = scmp.le.f32.partialorder %s1589_s14, %s1505_s16 }
 0x109   : > { %s1833_s17 = smov (!%p1506_p8), 0  }
 0x10a   : > { %1509 = sbr.rel (%p1506_p8) target bundleno = 948 (0x3b4), region = 467 }
 0x10f LB: >> { %s1838_s20 = smov 0   ;;  %s1681_s17 = sphi %s1833_s17, %s2078_s17  }
 0x110 LB: >>> { %s478_s30 = smov [#allocation20]  ;;  %v482_v6 = vmov %v1797_v6  ;;  %v485_v7 = vmov %v1799_v7  ;;  %s498_s21 = smov [#allocation21]  ;;  %vm801_vm14 = vcmp.eq.s32.totalorder %v1799_v7, 0  ;;  %vm813_vm15 = vcmp.eq.s32.totalorder %v1799_v7, 1  ;;  %s1685_s20 = sphi %s1838_s20, %s477_s20  }
 0x111   : >>> { %v502_v6 = vmov %v1797_v6  ;;  %v505_v7 = vmov %v1799_v7  ;;  %v486_v54 = vld [vmem:[%s478_s30] sm:$0x3]  ;;  %vm489_vm5 = vcmp.eq.s32.totalorder %v485_v7, %v482_v6  ;;  %s518_s22 = smov [#allocation23]  ;;  %s479_s29 = smov [#allocation24] }
 0x112   : >>> { %vm509_vm6 = vcmp.eq.s32.totalorder %v505_v7, %v502_v6  ;;  %v522_v6 = vmov %v1797_v6  ;;  %v525_v7 = vmov %v1799_v7  ;;  %v490_v55 = vsel %vm489_vm5, %v486_v54, 0.0  ;;  %v506_v56 = vld [vmem:[%s498_s21] sm:$0x3]  ;;  %s499_s14 = smov [#allocation25]  ;;  %s519_s15 = smov [#allocation26] }
 0x113   : >>> { %vm529_vm7 = vcmp.eq.s32.totalorder %v525_v7, %v522_v6  ;;  %v491_v57 = vrot.slane %v490_v55, 4  ;;  %v510_v58 = vsel %vm509_vm6, %v506_v56, 0.0  ;;  %v526_v59 = vld [vmem:[%s518_s22] sm:$0x3]  ;;  %s542_s16 = smov [#allocation25]  ;;  %s540_s30 = smov [#allocation24]  ;;  %v591_v6 = vmov %v1797_v6 }
 0x114   : >>> { %v511_v60 = vrot.slane %v510_v58, 4  ;;  %v530_v61 = vsel %vm529_vm7, %v526_v59, 0.0  ;;  %s544_s21 = smov [#allocation26]  ;;  %s579_s22 = smov [#allocation27]  ;;  %v594_v7 = vmov %v1799_v7  ;;  %v606_v6 = vmov %v1797_v6 }
 0x115   : >>> { %v492_v62 = vadd.f32 %v491_v57, %v490_v55  ;;  %v531_v63 = vrot.slane %v530_v61, 4  ;;  %v609_v7 = vmov %v1799_v7  ;;  %vm596_vm12 = vcmp.eq.s32.totalorder %v594_v7, %v591_v6  ;;  %s1857_s24 = smov [#allocation22]  ;;  %s1863_s23 = smov [#allocation14] }
 0x116   : >>> { %v512_v0 = vadd.f32 %v511_v60, %v510_v58  ;;  %vm611_vm13 = vcmp.eq.s32.totalorder %v609_v7, %v606_v6  ;;  %s841_s11 = smov [#allocation31]  ;;  %s1869_s27 = smov [#allocation18]  ;;  %v627_v55 = vld [vmem:[%s1857_s24] sm:$0x3]  ;;  %v704_v6 = vmov %v1797_v6  ;;  %v707_v7 = vmov %v1799_v7 }
 0x117   : >>> { %v493_v1 = vrot.slane %v492_v62, 2  ;;  %v532_v2 = vadd.f32 %v531_v63, %v530_v61  ;;  %v850_v58 = vld [vmem:[%s1863_s23] sm:$0x3]  ;;  %s619_s26 = smov [#allocation32]  ;;  %s843_s25 = smov [#allocation32]  ;;  %v718_v6 = vmov %v1797_v6  ;;  %v721_v7 = vmov %v1799_v7 }
 0x118   : >>> { %v513_v3 = vrot.slane %v512_v0, 2  ;;  %v852_v61 = vld [vmem:[%s1869_s27] sm:$0x3]  ;;  %vm711_vm0 = vcmp.eq.s32.totalorder %v707_v7, %v704_v6  ;;  %v677_v6 = vmov %v1797_v6  ;;  %v680_v7 = vmov %v1799_v7  ;;  %s477_s20 = sadd.s32 1, %s1685_s20  }
 0x119   : >>> { %v494_v4 = vadd.f32 %v493_v1, %v492_v62  ;;  %v533_v5 = vrot.slane %v532_v2, 2  ;;  %v691_v6 = vmov %v1797_v6  ;;  %v694_v7 = vmov %v1799_v7  ;;  %p474_p9 = scmp.ge.s32.totalorder %s477_s20, 3  }
 0x11a   : >>> { %v514_v8 = vadd.f32 %v513_v3, %v512_v0  ;;  %vm726_vm1 = vcmp.eq.s32.totalorder %v721_v7, %v718_v6  ;;  %vm685_vm3 = vcmp.eq.s32.totalorder %v680_v7, %v677_v6  ;;  %vm698_vm4 = vcmp.eq.s32.totalorder %v694_v7, %v691_v6 }
 0x11b   : >>> { %v495_v9 = vrot.slane %v494_v4, 1  ;;  %v534_v10 = vadd.f32 %v533_v5, %v532_v2  ;;  %vm740_vm5 = vcmp.eq.s32.totalorder %v1797_v6, 0  ;;  %vm744_vm6 = vcmp.eq.s32.totalorder %v1797_v6, 1 }
 0x11c   : >>> { %v515_v11 = vrot.slane %v514_v8, 1  ;;  %v378_v6 = vmov (%p474_p9), %v1797_v6  ;;  %v381_v7 = vmov (%p474_p9), %v1799_v7 }
 0x11d   : >>> { %v496_v12 = vadd.f32 %v495_v9, %v494_v4  ;;  %v535_v13 = vrot.slane %v534_v10, 1  ;;  %v431_v6 = vmov (%p474_p9), %v1797_v6  ;;  %vm393_vm7 = vcmp.eq.s32.totalorder (%p474_p9), %v381_v7, %v378_v6 }
 0x11e   : >>> { %v516_v14 = vadd.f32 %v515_v11, %v514_v8  ;;  %v434_v7 = vmov (%p474_p9), %v1799_v7  ;;  %v397_v6 = vmov (%p474_p9), %v1797_v6 }
 0x11f   : >>> { %497 = vst [vmem:[%s479_s29] sm:$0x1] %v496_v12  ;;  %v536_v15 = vadd.f32 %v535_v13, %v534_v10  ;;  %s581_s29 = smov [#allocation28]  ;;  %v400_v7 = vmov (%p474_p9), %v1799_v7  ;;  %v414_v6 = vmov (%p474_p9), %v1797_v6 }
 0x120   : >>> { %517 = vst [vmem:[%s499_s14] sm:$0x1] %v516_v14  ;;  %s538_s14 = smov [#allocation29]  ;;  %v417_v7 = vmov (%p474_p9), %v1799_v7 }
 0x121   : >>> { %537 = vst [vmem:[%s519_s15] sm:$0x1] %v536_v15  ;;  %s539_s15 = smov [#allocation30]  ;;  %s583_s14 = smov %s538_s14 }
 0x122   : >>> { %s585_s15 = smov %s539_s15 }
 0x126   : >>> { %v541_v18 = vld [vmem:[%s540_s30] sm:$0xff]  ;;  %s602_s30 = smov [#allocation30] }
 0x127   : >>> { %v543_v16 = vld [vmem:[%s542_s16] sm:$0xff]  ;;  %v564_v33 = vand.u32 2147483647, %v541_v18  ;;  %s587_s16 = smov [#allocation29] }
 0x128   : >>> { %v547_v17 = vmul.f32 2.0, %v543_v16  ;;  %v545_v19 = vld [vmem:[%s544_s21] sm:$0xff]  ;;  %v565_v36 = vand.u32 2147483647, %v543_v16  ;;  %s600_s21 = smov [#allocation31] }
 0x129   : >>> { %v546_v20 = vsub.f32 %v545_v19, %v541_v18  ;;  %v566_v34 = vand.u32 2147483647, %v545_v19 }
 0x12a   : >>> { %1639 = vrcp.f32 %v547_v17 }
 0x12b   : >>> { %v567_v35 = vmin.f32 %v564_v33, %v566_v34 }
 0x12d   : >>> { %v568_v37 = vmul.f32 1.1920929e-08, %v567_v35 }
 0x12f   : >>> { %vm569_vm11 = vcmp.le.f32.partialorder %v565_v36, %v568_v37 }
 0x137   : >>> { %v1640_v21 = vpop.eup %1639 }
 0x138   : >>> { %v549_v22 = vmul.f32 %v1640_v21, %v546_v20 }
 0x13a   : >>> { %v551_v23 = vmul.f32 %v549_v22, %v549_v22  ;;  %vm550_vm10 = vcmp.ge.f32.partialorder %v549_v22, 0.0 }
 0x13c   : >>> { %v552_v24 = vadd.f32 1.0, %v551_v23 }
 0x13e   : >>> { %1641 = vrsqrt.f32 %v552_v24  ;;  %vm555_vm8 = vcmp.eq.f32.partialorder %v552_v24, inf  ;;  %v558_v26 = vand.u32 2147483648, %v552_v24  ;;  %vm557_vm9 = vcmp.eq.f32.partialorder %v552_v24, 0.0 }
 0x14b   : >>> { %v1642_v25 = vpop.eup %1641 }
 0x14c   : >>> { %v554_v27 = vmul.f32 %v1642_v25, %v552_v24 }
 0x14e   : >>> { %v556_v28 = vsel %vm555_vm8, %v552_v24, %v554_v27  ;;  %vm446_vm8 = vcmp.eq.s32.totalorder (%p474_p9), %v434_v7, %v431_v6 }
 0x14f   : >>> { %v559_v29 = vsel %vm557_vm9, %v558_v26, %v556_v28 }
 0x150   : >>> { %v560_v30 = vxor.u32 2147483648, %v559_v29 }
 0x152   : >>> { %v561_v31 = vsel %vm550_vm10, %v559_v29, %v560_v30 }
 0x153   : >>> { %v562_v32 = vadd.f32 %v561_v31, %v549_v22 }
 0x155   : >>> { %1643 = vrcp.f32 %v562_v32 }
 0x162   : >>> { %v1644_v38 = vpop.eup %1643 }
 0x163   : >>> { %v570_v39 = vsel %vm569_vm11, 0.0, %v1644_v38 }
 0x164   : >>> { %v571_v40 = vmul.f32 %v570_v39, %v570_v39  ;;  %v575_v41 = vmul.f32 %v570_v39, %v543_v16 }
 0x166   : >>> { %v572_v42 = vadd.f32 1.0, %v571_v40  ;;  %v576_v43 = vsub.f32 %v541_v18, %v575_v41  ;;  %v578_v44 = vadd.f32 %v575_v41, %v545_v19 }
 0x168   : >>> { %1645 = vrsqrt.f32 %v572_v42  ;;  %580 = vst [vmem:[%s579_s22] sm:$0xff] %v576_v43  ;;  %582 = vst [vmem:[%s581_s29] sm:$0xff] %v578_v44  ;;  %s617_s22 = smov [#allocation31]  ;;  %s1853_s29 = smov [#allocation20] }
 0x169   : >>> { %v625_v53 = vld [vmem:[%s1853_s29] sm:$0x3] }
 0x175   : >>> { %v1646_v45 = vpop.eup %1645 }
 0x176   : >>> { %584 = vst [vmem:[%s583_s14] sm:$0xff] %v1646_v45  ;;  %v574_v46 = vmul.f32 %v1646_v45, %v570_v39  ;;  %s615_s14 = smov [#allocation32] }
 0x178   : >>> { %586 = vst [vmem:[%s585_s15] sm:$0xff] %v574_v46  ;;  %s1855_s15 = smov [#allocation21] }
 0x179   : >>> { %v626_v54 = vld [vmem:[%s1855_s15] sm:$0x3] }
 0x17d   : >>> { %v588_v47 = vld [vmem:[%s587_s16] ss:$0 sm:$0xff]  ;;  %s1859_s16 = smov [#allocation23] }
 0x17e   : >>> { %v597_v48 = vsel %vm596_vm12, %v588_v47, 0.0  ;;  %v628_v56 = vld [vmem:[%s1859_s16] sm:$0x3] }
 0x17f   : >>> { %598 = vadd.xlane.f32.xlu0 %v597_v48  ;;  %v603_v49 = vld [vmem:[%s602_s30] ss:$0 sm:$0xff]  ;;  %s1861_s30 = smov [#allocation12] }
 0x180   : >>> { %v612_v50 = vsel %vm611_vm13, %v603_v49, 0.0  ;;  %v849_v57 = vld [vmem:[%s1861_s30] sm:$0x3] }
 0x183   : >>> { %613 = vadd.xlane.f32.xlu0 %v612_v50 }
 0x208   : >>> { %v599_v51 = vpop.xlane.xlu0 %598 }
 0x209   : >>> { %601 = vst [vmem:[%s600_s21] sm:$0xff] %v599_v51  ;;  %s1865_s21 = smov [#allocation16] }
 0x20a   : >>> { %v851_v59 = vld [vmem:[%s1865_s21] sm:$0x3] }
 0x20c   : >>> { %v614_v52 = vpop.xlane.xlu0 %613 }
 0x20d   : >>> { %616 = vst [vmem:[%s615_s14] sm:$0xff] %v614_v52  ;;  %s1889_s14 = smov [#allocation23] }
 0x210   : >>> { %v618_v60 = vld [vmem:[%s617_s22] sm:$0xff]  ;;  %s1887_s22 = smov [#allocation22] }
 0x211   : >>> { %v842_v62 = vld [vmem:[%s841_s11] sm:$0xff]  ;;  %v629_v63 = vmul.f32 %v625_v53, %v618_v60  ;;  %v632_v0 = vmul.f32 %v626_v54, %v618_v60  ;;  %v636_v1 = vmul.f32 %v627_v55, %v618_v60  ;;  %v639_v2 = vmul.f32 %v628_v56, %v618_v60  ;;  %s1885_s11 = smov [#allocation12] }
 0x212   : >>> { %v853_v3 = vmul.f32 %v849_v57, %v842_v62  ;;  %v856_v4 = vmul.f32 %v850_v58, %v842_v62  ;;  %v860_v5 = vmul.f32 %v851_v59, %v842_v62  ;;  %v863_v8 = vmul.f32 %v852_v61, %v842_v62 }
 0x214   : >>> { %v620_v9 = vld [vmem:[%s619_s26] sm:$0xff]  ;;  %s647_s26 = smov [#allocation30] }
 0x215   : >>> { %v844_v10 = vld [vmem:[%s843_s25] sm:$0xff]  ;;  %v630_v11 = vmul.f32 %v627_v55, %v620_v9  ;;  %v633_v12 = vmul.f32 %v628_v56, %v620_v9  ;;  %v635_v13 = vmul.f32 %v625_v53, %v620_v9  ;;  %v638_v14 = vmul.f32 %v626_v54, %v620_v9  ;;  %s645_s25 = smov [#allocation29] }
 0x216   : >>> { %v854_v15 = vmul.f32 %v851_v59, %v844_v10  ;;  %v857_v16 = vmul.f32 %v852_v61, %v844_v10  ;;  %v859_v17 = vmul.f32 %v849_v57, %v844_v10  ;;  %v862_v18 = vmul.f32 %v850_v58, %v844_v10  ;;  %v646_v27 = vld [vmem:[%s645_s25] ss:$0 sm:$0xff]  ;;  %s674_s25 = smov [#allocation27] }
 0x217   : >>> { %v631_v19 = vsub.f32 %v629_v63, %v630_v11  ;;  %v634_v20 = vsub.f32 %v632_v0, %v633_v12  ;;  %v637_v21 = vadd.f32 %v636_v1, %v635_v13  ;;  %v640_v22 = vadd.f32 %v639_v2, %v638_v14  ;;  %v648_v28 = vld [vmem:[%s647_s26] ss:$0 sm:$0xff]  ;;  %s673_s26 = smov [#allocation20] }
 0x218   : >>> { %v855_v23 = vsub.f32 %v853_v3, %v854_v15  ;;  %v858_v24 = vsub.f32 %v856_v4, %v857_v16  ;;  %v861_v25 = vadd.f32 %v860_v5, %v859_v17  ;;  %v864_v26 = vadd.f32 %v863_v8, %v862_v18  ;;  %v681_v63 = vld [vmem:[%s674_s25] ss:$0 sm:$0xff]  ;;  %s917_s25 = sadd.s32 (%p474_p9), 1, %s1681_s17  }
 0x219   : >>> { %642 = vst [vmem:[%s1855_s15] sm:$0x3] %v634_v20  ;;  %644 = vst [vmem:[%s1859_s16] sm:$0x3] %v640_v22  ;;  %s1891_s15 = smov [#allocation20]  ;;  %s715_s16 = smov [#allocation28] }
 0x21a   : >>> { %641 = vst [vmem:[%s1853_s29] sm:$0x3] %v631_v19  ;;  %643 = vst [vmem:[%s1857_s24] sm:$0x3] %v637_v21  ;;  %s1893_s24 = smov [#allocation16]  ;;  %s1901_s29 = smov [#allocation21]  ;;  %v722_v59 = vld [vmem:[%s715_s16] ss:$0 sm:$0xff] }
 0x21b   : >>> { %865 = vst [vmem:[%s1861_s30] sm:$0x3] %v855_v23  ;;  %866 = vst [vmem:[%s1863_s23] sm:$0x3] %v858_v24  ;;  %s1895_s23 = smov [#allocation14]  ;;  %s701_s30 = smov [#allocation22] }
 0x21c   : >>> { %867 = vst [vmem:[%s1865_s21] sm:$0x3] %v861_v25  ;;  %868 = vst [vmem:[%s1869_s27] sm:$0x3] %v864_v26  ;;  %s1899_s27 = smov [#allocation18]  ;;  %s714_s21 = smov [#allocation23] }
 0x21d   : >>> { %s817_s16 = smov [#allocation21]  ;;  %p470_p10 = scmp.ge.s32.totalorder (%p474_p9), %s917_s25, 15 }
 0x21e   : >> { %s2078_s17 = smov (%p474_p9), %s917_s25 }
 0x220   : >>> { %v656_v30 = vld [vmem:[%s1889_s14] sm:$0x3] }
 0x221   : >>> { %v655_v29 = vld [vmem:[%s1887_s22] sm:$0x3]  ;;  %v664_v36 = vmul.f32 %v656_v30, %v648_v28  ;;  %v667_v42 = vmul.f32 %v656_v30, %v646_v27 }
 0x222   : >>> { %v653_v31 = vld [vmem:[%s1891_s15] sm:$0x3]  ;;  %v663_v35 = vmul.f32 %v655_v29, %v646_v27  ;;  %v666_v37 = vmul.f32 %v655_v29, %v648_v28 }
 0x223   : >>> { %v871_v32 = vld [vmem:[%s1885_s11] ss:$0 sm:$0xff]  ;;  %v1567_v34 = vld [vmem:[%s1885_s11 + $0x1] ss:$0 sm:$0xff]  ;;  %v657_v48 = vmul.f32 %v653_v31, %v646_v27  ;;  %v660_v49 = vmul.f32 %v653_v31, %v648_v28 }
 0x224   : >>> { %v1566_v33 = vld [vmem:[%s1885_s11 - $0x1] sm:$0x2]  ;;  %v1569_v40 = vld [vmem:[%s1893_s24 + $0x1] sm:$0x1]  ;;  %v665_v47 = vsub.f32 %v663_v35, %v664_v36  ;;  %v668_v53 = vadd.f32 %v667_v42, %v666_v37 }
 0x225   : >>> { %v878_v38 = vsel %vm801_vm14, %v871_v32, %v1566_v33  ;;  %v882_v39 = vld [vmem:[%s1893_s24] ss:$0 sm:$0xff]  ;;  %v890_v43 = vsel %vm813_vm15, %v1567_v34, %v1569_v40  ;;  %v1571_v45 = vld [vmem:[%s1895_s23 + $0x1] ss:$0 sm:$0xff] }
 0x226   : >>> { %v895_v41 = vld [vmem:[%s1895_s23] ss:$0 sm:$0xff]  ;;  %881 = vst [vmem:[%s1885_s11] sm:$0x3] %v878_v38  ;;  %892 = vst [vmem:[%s1893_s24] sm:$0x3] %v890_v43  ;;  %v1573_v51 = vld [vmem:[%s1899_s27 + $0x1] sm:$0x1] }
 0x227   : >>> { %v1570_v44 = vld [vmem:[%s1895_s23 - $0x1] sm:$0x2]  ;;  %1568 = vst [vmem:[%s1885_s11 + $0x1] sm:$0x1] %v882_v39  ;;  %v914_v54 = vsel %vm813_vm15, %v1571_v45, %v1573_v51  ;;  %671 = vst [vmem:[%s1887_s22] sm:$0x3] %v665_v47  ;;  %s688_s11 = smov [#allocation21] }
 0x228   : >>> { %v906_v46 = vld [vmem:[%s1899_s27] ss:$0 sm:$0xff]  ;;  %v902_v50 = vsel %vm801_vm14, %v895_v41, %v1570_v44  ;;  %672 = vst [vmem:[%s1889_s14] sm:$0x3] %v668_v53  ;;  %s1943_s22 = smov [#allocation22]  ;;  %s1688_s14 = smov 1  }
 0x229   : >>> { %v654_v52 = vld [vmem:[%s1901_s29] sm:$0x3]  ;;  %905 = vst [vmem:[%s1895_s23] sm:$0x3] %v902_v50  ;;  %916 = vst [vmem:[%s1899_s27] sm:$0x3] %v914_v54  ;;  %s730_s24 = smov [#allocation21]  ;;  %s1946_s27 = smov [#allocation23] }
 0x22a   : >>> { %v658_v55 = vmul.f32 %v654_v52, %v648_v28  ;;  %v661_v56 = vmul.f32 %v654_v52, %v646_v27  ;;  %1572 = vst [vmem:[%s1895_s23 + $0x1] sm:$0x1] %v906_v46  ;;  %s1689_s23 = smov 127  }
 0x22c   : >>> { %v659_v57 = vsub.f32 %v657_v48, %v658_v55  ;;  %v662_v58 = vadd.f32 %v661_v56, %v660_v49 }
 0x22e   : >>> { %669 = vst [vmem:[%s1891_s15] sm:$0x3] %v659_v57  ;;  %670 = vst [vmem:[%s1901_s29] sm:$0x3] %v662_v58  ;;  %v708_v60 = vld [vmem:[%s701_s30] sm:$0x3]  ;;  %s729_s15 = smov [#allocation20]  ;;  %s793_s29 = smov [#allocation20] }
 0x22f   : >>> { %v712_v61 = vsel %vm711_vm0, 0.0, %v708_v60  ;;  %v723_v62 = vld [vmem:[%s714_s21] sm:$0x3] }
 0x230   : >>> { %713 = vst [vmem:[%s701_s30] sm:$0x3] %v712_v61  ;;  %v727_v0 = vsel %vm726_vm1, %v722_v59, %v723_v62  ;;  %s794_s30 = smov [#allocation22] }
 0x231   : >>> { %728 = vst [vmem:[%s714_s21] sm:$0x3] %v727_v0  ;;  %s818_s21 = smov [#allocation23] }
 0x235   : >>> { %v682_v1 = vld [vmem:[%s673_s26] sm:$0x3] }
 0x236   : >>> { %v695_v2 = vld [vmem:[%s688_s11] sm:$0x3]  ;;  %v686_v3 = vsel %vm685_vm3, %v681_v63, %v682_v1 }
 0x237   : >>> { %v699_v4 = vsel %vm698_vm4, 0.0, %v695_v2  ;;  %687 = vst [vmem:[%s673_s26] sm:$0x3] %v686_v3  ;;  %v767_v5 = vld [vmem:[%s1943_s22] sm:$0x3]  ;;  %s382_s26 = smov (%p474_p9), [#allocation20] }
 0x238   : >>> { %700 = vst [vmem:[%s688_s11] sm:$0x3] %v699_v4  ;;  %768 = vrot.lane.b32.xlu0 %v767_v5, %s1688_s14  ;;  %v763_v11 = vld [vmem:[%s1946_s27] sm:$0x3]  ;;  %s401_s11 = smov (%p474_p9), [#allocation21] }
 0x239   : >>> { %v784_v12 = vld [vmem:[%s1946_s27] sm:$0x3] }
 0x23a   : >>> { %v766_v30 = vld [vmem:[%s1943_s22] sm:$0x3] }
 0x23e   : >>> { %v735_v8 = vld [vmem:[%s729_s15] sm:$0x3] }
 0x23f   : >>> { %736 = vrot.lane.b32.xlu1 %v735_v8, %s1688_s14  ;;  %v731_v9 = vld [vmem:[%s730_s24] sm:$0x3] }
 0x240   : >>> { %v752_v10 = vld [vmem:[%s730_s24] sm:$0x3] }
 0x241   : >>> { %v734_v18 = vld [vmem:[%s729_s15] sm:$0x3] }
 0x243   : >>> { %732 = vrot.lane.b32.xlu1 %v731_v9, %s1688_s14 }
 0x247   : >>> { %753 = vrot.lane.b32.xlu1 %v752_v10, %s1689_s23 }
 0x24b   : >>> { %764 = vrot.lane.b32.xlu1 %v763_v11, %s1688_s14  ;;  %s435_s14 = smov (%p474_p9), [#allocation23] }
 0x24f   : >>> { %785 = vrot.lane.b32.xlu1 %v784_v12, %s1689_s23 }
 0x2aa   : >>> { %v769_v20 = vpop.permute.xlu0 %768 }
 0x2ab   : >>> { %v773_v22 = vsel %vm740_vm5, %v767_v5, %v769_v20 }
 0x2b1   : >>> { %v737_v13 = vpop.permute.xlu1 %736 }
 0x2b2   : >>> { %v741_v14 = vsel %vm740_vm5, %v735_v8, %v737_v13 }
 0x2b5   : >>> { %v733_v15 = vpop.permute.xlu1 %732 }
 0x2b6   : >>> { %v745_v16 = vsel %vm744_vm6, %v733_v15, %v741_v14 }
 0x2b7   : >>> { %v751_v17 = vsel %vm1427_vm2, %v745_v16, 0.0 }
 0x2b8   : >>> { %759 = vst [vmem:[%s729_s15] sm:$0x3] %v751_v17 }
 0x2b9   : >>> { %v754_v19 = vpop.permute.xlu1 %753 }
 0x2ba   : >>> { %v758_v21 = vsel %vm744_vm6, %v734_v18, %v754_v19 }
 0x2bb   : >>> { %760 = vst [vmem:[%s730_s24] sm:$0x3] %v758_v21 }
 0x2bd   : >>> { %v765_v23 = vpop.permute.xlu1 %764 }
 0x2be   : >>> { %v777_v24 = vsel %vm744_vm6, %v765_v23, %v773_v22 }
 0x2bf   : >>> { %v795_v25 = vld [vmem:[%s793_s29] ss:$0 sm:$0xff]  ;;  %v1559_v27 = vld [vmem:[%s793_s29 + $0x1] ss:$0 sm:$0xff]  ;;  %v783_v29 = vsel %vm1427_vm2, %v777_v24, 0.0 }
 0x2c0   : >>> { %v1558_v26 = vld [vmem:[%s793_s29 - $0x1] sm:$0x2]  ;;  %791 = vst [vmem:[%s1943_s22] sm:$0x3] %v783_v29  ;;  %s418_s22 = smov (%p474_p9), [#allocation22] }
 0x2c1   : >>> { %v802_v28 = vsel %vm801_vm14, %v795_v25, %v1558_v26  ;;  %v786_v31 = vpop.permute.xlu1 %785 }
 0x2c2   : >>> { %805 = vst [vmem:[%s793_s29] sm:$0x3] %v802_v28  ;;  %v819_v32 = vld [vmem:[%s817_s16] ss:$0 sm:$0xff]  ;;  %v1563_v34 = vld [vmem:[%s817_s16 + $0x1] ss:$0 sm:$0xff]  ;;  %v790_v35 = vsel %vm744_vm6, %v766_v30, %v786_v31 }
 0x2c3   : >>> { %v1562_v33 = vld [vmem:[%s817_s16 - $0x1] sm:$0x2]  ;;  %792 = vst [vmem:[%s1946_s27] sm:$0x3] %v790_v35 }
 0x2c4   : >>> { %v826_v36 = vsel %vm801_vm14, %v819_v32, %v1562_v33 }
 0x2c5   : >>> { %829 = vst [vmem:[%s817_s16] sm:$0x3] %v826_v36 }
 0x2c7   : >>> { %v806_v37 = vld [vmem:[%s794_s30] ss:$0 sm:$0xff]  ;;  %v1561_v38 = vld [vmem:[%s794_s30 + $0x1] sm:$0x1] }
 0x2c8   : >>> { %1560 = vst [vmem:[%s793_s29 + $0x1] sm:$0x1] %v806_v37  ;;  %v814_v39 = vsel %vm813_vm15, %v1559_v27, %v1561_v38 }
 0x2c9   : >>> { %816 = vst [vmem:[%s794_s30] sm:$0x3] %v814_v39 }
 0x2ca   : >>> { %v830_v40 = vld [vmem:[%s818_s21] ss:$0 sm:$0xff]  ;;  %v1565_v41 = vld [vmem:[%s818_s21 + $0x1] sm:$0x1] }
 0x2cb   : >>> { %1564 = vst [vmem:[%s817_s16 + $0x1] sm:$0x1] %v830_v40  ;;  %v838_v42 = vsel %vm813_vm15, %v1563_v34, %v1565_v41 }
 0x2cc   : >>> { %840 = vst [vmem:[%s818_s21] sm:$0x3] %v838_v42  ;;  %476 = sbr.rel (!%p474_p9) target bundleno = 272 (0x110), region = 462 }
 0x2cf   : >> { %v388_v43 = vld [vmem:[%s382_s26] sm:$0x3] (%p474_p9) }
 0x2d0   : >> { %v389_v45 = vsel (%p474_p9), %vm1427_vm2, %v388_v43, 0.0  ;;  %v424_v47 = vld [vmem:[%s418_s22] sm:$0x3] (%p474_p9) }
 0x2d1   : >> { %v390_v49 = vmul.f32 %v389_v45, %v389_v45  ;;  %v425_v51 = vsel %vm1427_vm2, %v424_v47, 0.0 }
 0x2d2   : >> { %v407_v44 = vld [vmem:[%s401_s11] sm:$0x3]  ;;  %v426_v53 = vmul.f32 %v425_v51, %v425_v51 }
 0x2d3   : >> { %v408_v46 = vsel %vm1427_vm2, %v407_v44, 0.0  ;;  %v441_v48 = vld [vmem:[%s435_s14] sm:$0x3]  ;;  %v394_v56 = vsel %vm393_vm7, 0.0, %v390_v49 }
 0x2d4   : >> { %v409_v50 = vmul.f32 %v408_v46, %v408_v46  ;;  %v442_v52 = vsel %vm1427_vm2, %v441_v48, 0.0 }
 0x2d5   : >> { %v443_v55 = vmul.f32 %v442_v52, %v442_v52 }
 0x2d6   : >> { %v411_v54 = vadd.f32 %v409_v50, %v390_v49  ;;  %v410_v57 = vadd.f32 %v409_v50, %v394_v56 }
 0x2d7   : >> { %v447_v60 = vsel %vm446_vm8, 0.0, %v443_v55 }
 0x2d8   : >> { %v428_v58 = vadd.f32 %v426_v53, %v411_v54  ;;  %v427_v59 = vadd.f32 %v426_v53, %v410_v57 }
 0x2da   : >> { %v449_v61 = vadd.f32 %v443_v55, %v428_v58  ;;  %v448_v62 = vadd.f32 %v447_v60, %v427_v59 }
 0x2dc   : >> { %450 = vadd.xlane.f32.xlu0 %v449_v61 }
 0x2e0   : >> { %458 = vadd.xlane.f32.xlu0 %v448_v62 }
 0x365   : >> { %v451_v63 = vpop.xlane.xlu0 %450 }
 0x366   : >> { %v452_v0 = vrot.slane %v451_v63, 4 }
 0x368   : >> { %v453_v1 = vadd.f32 %v452_v0, %v451_v63 }
 0x369   : >> { %v459_v2 = vpop.xlane.xlu0 %458 }
 0x36a   : >> { %v454_v3 = vrot.slane %v453_v1, 2  ;;  %v460_v4 = vrot.slane %v459_v2, 4 }
 0x36c   : >> { %v461_v5 = vadd.f32 %v460_v4, %v459_v2  ;;  %v455_v8 = vadd.f32 %v454_v3, %v453_v1 }
 0x36e   : >> { %v462_v9 = vrot.slane %v461_v5, 2  ;;  %v456_v11 = vrot.slane %v455_v8, 1 }
 0x370   : >> { %v463_v10 = vadd.f32 %v462_v9, %v461_v5  ;;  %v457_v14 = vadd.f32 %v456_v11, %v455_v8 }
 0x372   : >> { %v464_v12 = vrot.slane %v463_v10, 1 }
 0x374   : >> { %v465_v13 = vadd.f32 %v464_v12, %v463_v10 }
 0x376   : >> { %1592 = vpush %v465_v13 }
 0x377   : >> { %1594 = vpush %v457_v14 }
 0x3a7   : >> { %s1593_s20 = spop %1592 }
 0x3a8   : >> { %s1595_s15 = spop %1594 }
 0x3a9   : >> { %s468_s24 = smul.f32 1e-10, %s1595_s15 }
 0x3ab   : >> { %p469_p11 = scmp.le.f32.partialorder %s1593_s20, %s468_s24 }
 0x3ad   : >> { %p471_p12 = por %p470_p10, %p469_p11 }
 0x3af   : > { %919 = sbr.rel (!%p471_p12) target bundleno = 271 (0x10f), region = 473 }
 0x3b4 PF: > { %s924_s23 = smov [#allocation20]  ;;  %v928_v6 = vmov %v1797_v6  ;;  %v931_v7 = vmov %v1799_v7  ;;  %v984_v15 = vld [vmem:[#allocation12] sm:$0x3]  ;;  %v992_v16 = vld [vmem:[#allocation14] sm:$0x3]  ;;  %s2079_s17 = scalar_lea.vmem [#allocation13], %s1793_s28 }
 0x3b5   : > { %v948_v6 = vmov %v1797_v6  ;;  %v951_v7 = vmov %v1799_v7  ;;  %v932_v17 = vld [vmem:[%s924_s23] sm:$0x3]  ;;  %vm935_vm9 = vcmp.eq.s32.totalorder %v931_v7, %v928_v6  ;;  %987 = vst [vmem:[%s2079_s17] sm:$0x3] %v984_v15  ;;  %s2080_s27 = scalar_lea.vmem [#allocation15], %s1793_s28  ;;  %s944_s29 = smov [#allocation23] }
 0x3b6   : > { %vm955_vm10 = vcmp.eq.s32.totalorder %v951_v7, %v948_v6  ;;  %995 = vst [vmem:[%s2080_s27] sm:$0x3] %v992_v16  ;;  %v1000_v18 = vld [vmem:[#allocation16] sm:$0x3]  ;;  %v936_v19 = vsel %vm935_vm9, %v932_v17, 0.0  ;;  %s2081_s16 = scalar_lea.vmem [#allocation17], %s1793_s28  ;;  %s2082_s30 = scalar_lea.vmem [#allocation19], %s1793_s28 }
 0x3b7   : > { %1003 = vst [vmem:[%s2081_s16] sm:$0x3] %v1000_v18  ;;  %v1008_v20 = vld [vmem:[#allocation18] sm:$0x3]  ;;  %v937_v21 = vrot.slane %v936_v19, 4  ;;  %v952_v22 = vld [vmem:[%s944_s29] sm:$0x3] }
 0x3b8   : > { %1011 = vst [vmem:[%s2082_s30] sm:$0x3] %v1008_v20  ;;  %v956_v23 = vsel %vm955_vm10, %v952_v22, 0.0  ;;  %s920_s21 = sand.u32 7, %s1756_s12   ;;  %s2083_s11 = scalar_lea.vmem [#allocation9], %s1795_s18 }
 0x3b9   : > { %v938_v24 = vadd.f32 %v937_v21, %v936_v19  ;;  %v957_v25 = vrot.slane %v956_v23, 4  ;;  %s921_s25 = scalar_lea.vmem [#allocation8], %s920_s21  ;;  %s923_s26 = scalar_lea.vmem [#allocation10], %s920_s21 }
 0x3ba   : > { %s925_s25 = smov %s921_s25  ;;  %s945_s26 = smov %s923_s26 }
 0x3bb   : > { %v939_v26 = vrot.slane %v938_v24, 2  ;;  %v958_v6 = vadd.f32 %v957_v25, %v956_v23  ;;  %s2084_s22 = scalar_lea.vmem [#allocation11], %s1795_s18  ;;  %s1039_s14 = sshrl.u32 (%p1770_p3), %s1756_s12, 3 }
 0x3bc   : > { %s2085_s20 = scalar_lea.vmem (%p1770_p3), [#allocation9], %s1795_s18  ;;  %s1580_s15 = sshll.u32 (%p1770_p3), %s1039_s14, 1 }
 0x3bd   : > { %v940_v7 = vadd.f32 %v939_v26, %v938_v24  ;;  %v959_v27 = vrot.slane %v958_v6, 2  ;;  %s1041_s17 = scalar_lea.vmem (%p1770_p3), %s2070_s4, %s1580_s15 }
 0x3bf   : > { %v941_v28 = vrot.slane %v940_v7, 1  ;;  %v960_v29 = vadd.f32 %v959_v27, %v958_v6 }
 0x3c1   : > { %v942_v30 = vadd.f32 %v941_v28, %v940_v7  ;;  %v961_v31 = vrot.slane %v960_v29, 1 }
 0x3c3   : > { %943 = vst [vmem:[%s925_s25] sm:$0x1] %v942_v30  ;;  %v962_v32 = vadd.f32 %v961_v31, %v960_v29 }
 0x3c5   : > { %963 = vst [vmem:[%s945_s26] sm:$0x1] %v962_v32 }
 0x3c9   : > { %1038 = sbr.rel (!%p1770_p3) target bundleno = 980 (0x3d4), region = 158 }
 0x3ca   : > { %v968_v33 = vld [vmem:[#allocation8] sm:$0x3] }
 0x3cb   : > { %971 = vst [vmem:[%s2083_s11] sm:$0x3] %v968_v33 }
 0x3cc   : > { %v976_v34 = vld [vmem:[#allocation10] sm:$0x3] }
 0x3cd   : > { %979 = vst [vmem:[%s2084_s22] sm:$0x3] %v976_v34 }
 0x3d2   : > { %v1058_v35 = vld [vmem:[%s2085_s20] sm:$0x3] }
 0x3d3   : > { %1059 = vst [vmem:[%s1041_s17] sm:$0x3] %v1058_v35 }
 0x3d4 PF: > { %1077 = sbr.rel (!%p1770_p3) target bundleno = 988 (0x3dc), region = 192  ;;  %s1078_s27 = sshrl.u32 (%p1770_p3), %s1756_s12, 3 }
 0x3d5   : > { %s2086_s29 = scalar_lea.vmem (%p1770_p3), [#allocation11], %s1795_s18  ;;  %s1581_s16 = sshll.u32 (%p1770_p3), %s1078_s27, 1 }
 0x3d6   : > { %s1080_s25 = scalar_lea.vmem (%p1770_p3), %s2071_s5, %s1581_s16 }
 0x3da   : > { %v1097_v36 = vld [vmem:[%s2086_s29] sm:$0x3] }
 0x3db   : > { %1098 = vst [vmem:[%s1080_s25] sm:$0x3] %v1097_v36 }
 0x3dc PF: > { %s1582_s26 = sshll.u32 %s1756_s12, 1  ;;  %s2087_s19 = scalar_lea.vmem [#allocation13], %s1793_s28 }
 0x3dd   : > { %v1132_v37 = vld [vmem:[%s2087_s19] sm:$0x3]  ;;  %s2088_s11 = scalar_lea.vmem [#allocation15], %s1793_s28  ;;  %s1115_s14 = scalar_lea.vmem %s2072_s6, %s1582_s26 }
 0x3de   : > { %v1167_v38 = vld [vmem:[%s2088_s11] sm:$0x3]  ;;  %s1150_s24 = scalar_lea.vmem %s2073_s7, %s1582_s26  ;;  %s2089_s23 = scalar_lea.vmem [#allocation17], %s1793_s28  ;;  %1133 = vst [vmem:[%s1115_s14] sm:$0x3] %v1132_v37 }
 0x3df   : > { %v1202_v39 = vld [vmem:[%s2089_s23] sm:$0x3]  ;;  %s2090_s17 = scalar_lea.vmem [#allocation19], %s1793_s28  ;;  %1168 = vst [vmem:[%s1150_s24] sm:$0x3] %v1167_v38  ;;  %s1185_s29 = scalar_lea.vmem %s2074_s8, %s1582_s26 }
 0x3e0   : > { %v1237_v40 = vld [vmem:[%s2090_s17] sm:$0x3]  ;;  %s1220_s21 = scalar_lea.vmem %s2075_s9, %s1582_s26  ;;  %1203 = vst [vmem:[%s1185_s29] sm:$0x3] %v1202_v39 }
 0x3e1   : > { %1238 = vst [vmem:[%s1220_s21] sm:$0x3] %v1237_v40 }
 0x3e2 PF: > { %s2091_s25 = sld [smem:[#allocation33_spill]]  ;;  %p13_p13 = scmp.ge.s32.totalorder %s1759_s13, 4  }
 0x3e3   : > { %s2092_s30 = smov %s1673_s10  ;;  %s2094_s11 = smov %s1759_s13 }
 0x3e4   :  { %15 = sbr.rel (!%p13_p13) target bundleno = 2 (0x2), region = 484 }
 0x3e8   : > { %s2093_s10 = smov %s2091_s25 }

// kernel: reverse
= control target key start
LH: loop header
LB: loop body
LE: loop exit
PB: predicated region body
PF: predicated region fallthrough
CT: control target
= control target key end

     0   :  { %v2_v0 = vlaneseq  ;;  %s112_s0 = inlined_call_operand.vmem [shape: f32[2,3], index: 0, kind: input, shape index: {}]   ;;  %s113_s1 = inlined_call_operand.vmem [shape: f32[2,3], index: 1, kind: output, shape index: {}]  }
   0x2   :  { %v3_v1 = vsub.s32 2, %v2_v0 }
   0x4   :  { %4 = vset.pattern.permute.xlu0 %v3_v1 }
   0x5   :  { %v21_v2 = vld [vmem:[%s112_s0] sm:$0x3] }
   0x6   :  { %22 = vst [vmem:[#allocation1] sm:$0x3] %v21_v2 }
   0xd   :  { %v41_v3 = vld [vmem:[#allocation1] sm:$0x3] }
   0xe   :  { %42 = vst [vmem:[#allocation0] sm:$0x3] %v41_v3 }
  0x15   :  { %v43_v4 = vld [vmem:[#allocation0] sm:$0xff] }
  0x16   :  { %44 = vperm.xlu0 %4, %v43_v4  }
  0x91   :  { %v45_v5 = vpop.permute.xlu0 %44 }
  0x92   :  { %46 = vst [vmem:[#allocation2] sm:$0xff] %v45_v5 }
  0x99   :  { %v51_v6 = vld [vmem:[#allocation2] sm:$0x3] }
  0x9a   :  { %54 = vst [vmem:[#allocation3] sm:$0x3] %v51_v6 }
  0xa1   :  { %v71_v7 = vld [vmem:[#allocation3] sm:$0x3] }
  0xa2   :  { %72 = vst [vmem:[%s113_s1] sm:$0x3] %v71_v7 }

// kernel: custom-call.16
= control target key start
LH: loop header
LB: loop body
LE: loop exit
PB: predicated region body
PF: predicated region fallthrough
CT: control target
= control target key end

     0   :  { %s664_s9 = smov 0   ;;  %s666_s10 = smov 0   ;;  %s810_s0 = inlined_call_operand.vmem [shape: f32[2,3,3], index: 0, kind: input, shape index: {}]   ;;  %s811_s1 = inlined_call_operand.vmem [shape: f32[2,3,3], index: 1, kind: output, shape index: {0}]   ;;  %s812_s2 = inlined_call_operand.vmem [shape: f32[2,3], index: 2, kind: output, shape index: {1}]  }
   0x1   :  { %s668_s11 = smov 0   ;;  %s670_s12 = smov 0  }
   0x2   :  { %s672_s13 = smov 0  }
   0x3 LB: > { %s28_s14 = sadd.s32 1, %s637_s12  ;;  %s519_s15 = sadd.s32 4294967295, %s641_s13   ;;  %s641_s13 = sphi %s672_s13, %s9_s13   ;;  %s637_s12 = sphi %s670_s12, %s819_s12   ;;  %s633_s11 = sphi %s668_s11, %s818_s11   ;;  %s629_s10 = sphi %s666_s10, %s817_s10   ;;  %s625_s9 = sphi %s664_s9, %s816_s9  }
   0x4   : > { %p30_p0 = scmp.ge.s32.totalorder %s28_s14, 2  ;;  %s33_s16 = ssub.s32 0, %s637_s12 }
   0x5   : > { %s521_s17 = smin.u32 %s637_s12, %s33_s16  ;;  %p57_p1 = scmp.ne.s32.totalorder %s629_s10, %s625_s9 }
   0x6   : > { %s821_s14 = smov (%p30_p0, %s28_s14), 0  ;;  %s35_s18 = sshrl.u32 %s521_s17, 3 }
   0x7   : > { %s39_s19 = ssub.s32 0, %s821_s14  ;;  %p58_p2 = scmp.eq.s32.totalorder %s519_s15, 1 }
   0x8   : > { %s522_s20 = smin.u32 %s39_s19, %s821_s14  ;;  %s47_s24 = sadd.s32 1, %s629_s10 }
   0x9   : > { %s41_s21 = sshrl.u32 %s522_s20, 3  ;;  %p699_p3 = por %p58_p2, %p57_p1 }
   0xa   : > { %s44_s23 = ssub.s32 %s35_s18, %s41_s21  ;;  %p524_p5 = scmp.ge.s32.totalorder %s641_s13, 2 }
   0xb   : > { %p45_p4 = scmp.eq.s32.totalorder %s44_s23, 0  ;;  %s82_s26 = sand.u32 (!%p524_p5), 1, %s641_s13  }
   0xc   : > { %80 = sbr.rel (%p524_p5) target bundleno = 19 (0x13), region = 16  ;;  %s526_s27 = sshll.u32 (!%p524_p5), %s637_s12, 2 }
   0xd   : > { %s705_s25 = scalar_select %p45_p4, %s629_s10, %s47_s24  }
   0xe   : > { %s525_s28 = sshll.u32 (!%p524_p5), %s82_s26, 2  ;;  %s88_s3 = scalar_lea.vmem (!%p524_p5), %s810_s0, %s526_s27 }
   0xf   : > { %s84_s4 = scalar_lea.vmem (!%p524_p5), [#allocation1], %s525_s28 }
  0x11   : > { %v105_v0 = vld [vmem:[%s88_s3] sm:$0xf] }
  0x12   : > { %106 = vst [vmem:[%s84_s4] sm:$0xf] %v105_v0 }
  0x13 PF: > { %p527_p6 = scmp.ge.s32.totalorder %s641_s13, 1  ;;  %p123_p7 = scmp.lt.s32.totalorder %s641_s13, 3 }
  0x15   : > { %p124_p8 = pnand %p527_p6, %p123_p7 }
  0x17   : > { %127 = sbr.rel (%p124_p8) target bundleno = 352 (0x160), region = 50 }
  0x1c   : > { %s134_s5 = sand.u32 1, %s519_s15   ;;  %s144_s6 = sand.u32 1, %s625_s9   ;;  %v647_v2 = vmov 0.0  }
  0x1d   : > { %s528_s7 = sshll.u32 %s134_s5, 2  ;;  %s716_s8 = sshll.u32 %s144_s6, 1 }
  0x1e   : > { %s136_s16 = scalar_lea.vmem [#allocation1], %s528_s7  ;;  %s158_s17 = sand.u32 7, %s633_s11  }
  0x1f   : > { %v150_v1 = vld [vmem:[%s136_s16] sm:$0xf]  ;;  %s719_s18 = scalar_lea.vmem [#allocation4], %s158_s17  ;;  %s722_s19 = scalar_lea.vmem [#allocation3], %s528_s7 }
  0x20   : > { %151 = vst [vmem:[#allocation0] sm:$0xf] %v150_v1  ;;  %162 = vst [vmem:[%s719_s18] sm:$0x1] %v647_v2  ;;  %s146_s15 = scalar_lea.vmem [#allocation5], %s716_s8  ;;  %s725_s20 = smov 0  }
  0x27   : > { %v160_v3 = vld [vmem:[#allocation0] sm:$0xff] }
  0x28   : > { %161 = vst [vmem:[#allocation2] sm:$0xff] %v160_v3 }
  0x29 LB: >> { %v170_v4 = vlaneseq  ;;  %v734_v6 = vstv %s645_s20  ;;  %s197_s9 = scalar_lea.vmem [#allocation2], %s645_s20  ;;  %s233_s21 = smov [#allocation2]  ;;  %v648_v60 = vmov 1.0   ;;  %v268_v61 = vld [vmem:[%s719_s18] ss:$0 sm:$0xff]  ;;  %s645_s20 = sphi %s725_s20, %s168_s20  }
  0x2a   : >> { %s255_s23 = scalar_lea.vmem [#allocation6], %s645_s20  ;;  %s271_s24 = smov [#allocation2] }
  0x2b   : >> { %v731_v5 = vshrl.u32 %v170_v4, 7  ;;  %v249_v49 = vand.u32 127, %v170_v4  ;;  %s272_s26 = smov [#allocation6] }
  0x2d   : >> { %vm174_vm0 = vcmp.gt.s32.totalorder %v731_v5, %v734_v6  ;;  %vm175_vm1 = vcmp.lt.s32.totalorder %v731_v5, 3  ;;  %v236_v5 = vmov %v731_v5  ;;  %vm749_vm12 = vcmp.eq.s32.totalorder %v249_v49, %v734_v6 }
  0x2e   : >> { %vm176_vm2 = vmand %vm174_vm0, %vm175_vm1  ;;  %vm240_vm9 = vcmp.gt.s32.totalorder %v236_v5, %v734_v6  ;;  %vm241_vm10 = vcmp.lt.s32.totalorder %v236_v5, 3  ;;  %v275_v5 = vmov %v731_v5  ;;  %vm301_vm15 = vcmp.gt.s32.totalorder %v249_v49, %v734_v6 }
  0x2f   : >> { %v169_v7 = vld [vmem:[#allocation2] sm:$0xff]  ;;  %v198_v16 = vld [vmem:[%s197_s9] ss:$0 sm:$0xff]  ;;  %vm242_vm11 = vmand %vm240_vm9, %vm241_vm10  ;;  %vm280_vm13 = vcmp.lt.s32.totalorder %v275_v5, 3  ;;  %v292_v5 = vmov %v731_v5 }
  0x30   : >> { %v177_v8 = vsel %vm176_vm2, %v169_v7, 0.0  ;;  %v199_v17 = vand.u32 2147483647, %v198_v16  ;;  %vm224_vm8 = vcmp.lt.f32.partialorder %v198_v16, 0.0  ;;  %v237_v46 = vld [vmem:[%s233_s21] sm:$0xff]  ;;  %vm309_vm14 = vcmp.ge.s32.totalorder %v292_v5, %v734_v6 }
  0x31   : >> { %v178_v9 = vmul.f32 %v177_v8, %v177_v8  ;;  %v243_v50 = vsel %vm242_vm11, %v237_v46, 0.0  ;;  %v278_v0 = vld [vmem:[%s271_s24] sm:$0xff]  ;;  %s288_s24 = smov %s271_s24  ;;  %vm310_vm0 = vmand %vm749_vm12, %vm309_vm14 }
  0x32   : >> { %v200_v22 = vmax.f32 %v199_v17, 0.0  ;;  %s313_s27 = scalar_lea.vmem %s288_s24, %s645_s20  ;;  %s168_s20 = sadd.s32 1, %s645_s20  }
  0x33   : >> { %v179_v10 = vrot.slane %v178_v9, 4  ;;  %p165_p9 = scmp.ge.s32.totalorder %s168_s20, 3  }
  0x34   : > { %s534_s28 = sshll.u32 (%p165_p9), %s633_s11, 2 }
  0x35   : >> { %v180_v11 = vadd.f32 %v179_v10, %v178_v9  ;;  %s348_s3 = scalar_lea.vmem (%p165_p9), %s811_s1, %s534_s28 }
  0x37   : >> { %v181_v12 = vrot.slane %v180_v11, 2 }
  0x39   : >> { %v182_v13 = vadd.f32 %v181_v12, %v180_v11 }
  0x3b   : >> { %v183_v14 = vrot.slane %v182_v13, 1 }
  0x3d   : >> { %v184_v15 = vadd.f32 %v183_v14, %v182_v13  ;;  %v299_v14 = vld [vmem:[%s288_s24] sm:$0xff] }
  0x3f   : >> { %589 = vrsqrt.f32 %v184_v15  ;;  %vm187_vm3 = vcmp.eq.f32.partialorder %v184_v15, inf  ;;  %v190_v19 = vand.u32 2147483648, %v184_v15  ;;  %vm189_vm4 = vcmp.eq.f32.partialorder %v184_v15, 0.0 }
  0x4c   : >> { %v590_v18 = vpop.eup %589 }
  0x4d   : >> { %v186_v20 = vmul.f32 %v590_v18, %v184_v15 }
  0x4f   : >> { %v188_v21 = vsel %vm187_vm3, %v184_v15, %v186_v20 }
  0x50   : >> { %v191_v23 = vsel %vm189_vm4, %v190_v19, %v188_v21 }
  0x51   : >> { %v201_v24 = vand.u32 2147483647, %v191_v23 }
  0x53   : >> { %v202_v25 = vmax.f32 %v200_v22, %v201_v24 }
  0x55   : >> { %591 = vrcp.f32 %v202_v25  ;;  %vm214_vm7 = vcmp.eq.f32.partialorder %v202_v25, 0.0 }
  0x62   : >> { %v592_v26 = vpop.eup %591 }
  0x63   : >> { %v204_v27 = vmul.f32 %v592_v26, %v199_v17  ;;  %v207_v28 = vmul.f32 0.0, %v592_v26  ;;  %v211_v29 = vmul.f32 %v592_v26, %v201_v24 }
  0x65   : >> { %v205_v30 = vmul.f32 %v204_v27, %v204_v27  ;;  %v208_v31 = vmul.f32 %v207_v28, %v207_v28  ;;  %v212_v32 = vmul.f32 %v211_v29, %v211_v29 }
  0x67   : >> { %v209_v33 = vadd.f32 %v208_v31, %v205_v30 }
  0x69   : >> { %v213_v34 = vadd.f32 %v212_v32, %v209_v33 }
  0x6b   : >> { %593 = vrsqrt.f32 %v213_v34  ;;  %vm217_vm5 = vcmp.eq.f32.partialorder %v213_v34, inf  ;;  %v220_v36 = vand.u32 2147483648, %v213_v34  ;;  %vm219_vm6 = vcmp.eq.f32.partialorder %v213_v34, 0.0 }
  0x78   : >> { %v594_v35 = vpop.eup %593 }
  0x79   : >> { %v216_v37 = vmul.f32 %v594_v35, %v213_v34 }
  0x7b   : >> { %v218_v38 = vsel %vm217_vm5, %v213_v34, %v216_v37 }
  0x7c   : >> { %v221_v39 = vsel %vm219_vm6, %v220_v36, %v218_v38 }
  0x7d   : >> { %v222_v40 = vmul.f32 %v221_v39, %v202_v25 }
  0x7f   : >> { %v223_v41 = vsel %vm214_vm7, 0.0, %v222_v40 }
  0x80   : >> { %v225_v42 = vxor.u32 2147483648, %v223_v41 }
  0x82   : >> { %v226_v43 = vsel %vm224_vm8, %v223_v41, %v225_v42 }
  0x83   : >> { %v742_v44 = vsel %vm189_vm4, %v198_v16, %v226_v43  ;;  %595 = vrcp.f32 %v226_v43  ;;  %v227_v47 = vsub.f32 %v226_v43, %v198_v16 }
  0x84   : >> { %v232_v45 = vsub.f32 %v198_v16, %v742_v44 }
  0x86   : >> { %597 = vrcp.f32 %v232_v45 }
  0x90   : >> { %v596_v48 = vpop.eup %595 }
  0x91   : >> { %v229_v51 = vmul.f32 %v596_v48, %v227_v47 }
  0x93   : >> { %v598_v52 = vpop.eup %597  ;;  %v231_v56 = vsel %vm189_vm4, 0.0, %v229_v51 }
  0x94   : >> { %v245_v53 = vmul.f32 %v598_v52, %v243_v50  ;;  %v261_v58 = vsel %vm749_vm12, %v231_v56, 0.0 }
  0x96   : >> { %v246_v55 = vsel %vm189_vm4, 0.0, %v245_v53 }
  0x97   : >> { %v251_v57 = vsel %vm749_vm12, %v246_v55, 0.0 }
  0x98   : >> { %252 = vadd.xlane.f32.xlu0 %v251_v57 }
  0x9c   : >> { %262 = vadd.xlane.f32.xlu0 %v261_v58 }
 0x121   : >> { %v253_v59 = vpop.xlane.xlu0 %252 }
 0x122   : >> { %254 = vst [vmem:[#allocation6] sm:$0xff] %v253_v59 }
 0x123   : >> { %256 = vst [vmem:[%s255_s23] sm:$0x1] %v648_v60 }
 0x125   : >> { %v263_v62 = vpop.xlane.xlu0 %262 }
 0x126   : >> { %v269_v63 = vsel %vm749_vm12, %v263_v62, %v268_v61 }
 0x127   : >> { %270 = vst [vmem:[%s719_s18] sm:$0x1] %v269_v63 }
 0x12a   : >> { %v277_v1 = vld [vmem:[%s272_s26] sm:$0xff]  ;;  %s289_s26 = smov %s272_s26 }
 0x12b   : >> { %v279_v2 = vmul.f32 %v278_v0, %v277_v1  ;;  %v297_v13 = vld [vmem:[%s289_s26] sm:$0xff] }
 0x12d   : >> { %v281_v3 = vsel %vm280_vm13, %v279_v2, 0.0 }
 0x12e   : >> { %v282_v4 = vrot.slane %v281_v3, 4  ;;  %v333_v6 = vld [vmem:[#allocation4] sm:$0x3] (%p165_p9) }
 0x12f   : > { %336 = vst [vmem:[%s146_s15] sm:$0x3] (%p165_p9), %v333_v6 }
 0x130   : >> { %v283_v7 = vadd.f32 %v282_v4, %v281_v3 }
 0x132   : >> { %v284_v8 = vrot.slane %v283_v7, 2 }
 0x134   : >> { %v285_v9 = vadd.f32 %v284_v8, %v283_v7 }
 0x136   : >> { %v286_v10 = vrot.slane %v285_v9, 1 }
 0x138   : >> { %v287_v11 = vadd.f32 %v286_v10, %v285_v9 }
 0x13a   : >> { %v293_v12 = vmul.f32 %v287_v11, %v263_v62 }
 0x13c   : >> { %v298_v15 = vmul.f32 %v297_v13, %v293_v12 }
 0x13e   : >> { %v302_v16 = vsub.f32 %v299_v14, %v298_v15 }
 0x140   : >> { %v303_v17 = vsel %vm301_vm15, %v302_v16, %v299_v14 }
 0x141   : >> { %v311_v18 = vsel %vm310_vm0, %v297_v13, %v303_v17 }
 0x142   : >> { %312 = vst [vmem:[%s288_s24] sm:$0xff] %v311_v18 }
 0x147   : > { %167 = sbr.rel (!%p165_p9) target bundleno = 41 (0x29), region = 167 }
 0x149   : >> { %v314_v19 = vld [vmem:[%s313_s27] ss:$0 sm:$0xff] }
 0x14a   : >> { %v319_v20 = vsel %vm749_vm12, %v742_v44, %v314_v19 }
 0x14b   : >> { %320 = vst [vmem:[%s313_s27] sm:$0x1] %v319_v20 }
 0x14c   : > { %p385_p10 = scmp.lt.s32.totalorder (%p699_p3), %s633_s11, 0  ;;  %s386_s4 = ssub.s32 (%p699_p3), 0, %s633_s11  ;;  %v409_v22 = vld [vmem:[%s146_s15] sm:$0x3] (%p699_p3) }
 0x14d   : > { %s535_s5 = smin.u32 (%p699_p3), %s633_s11, %s386_s4 }
 0x14e   : > { %s388_s6 = sshrl.u32 (%p699_p3), %s535_s5, 3 }
 0x14f   : > { %s389_s7 = ssub.s32 (%p699_p3), 0, %s388_s6 }
 0x152   : > { %v325_v5 = vld [vmem:[#allocation2] sm:$0xf] }
 0x153   : > { %328 = vst [vmem:[%s722_s19] sm:$0xf] %v325_v5 }
 0x157   : > { %384 = sbr.rel (!%p699_p3) target bundleno = 352 (0x160), region = 91 }
 0x15a   : > { %v365_v21 = vld [vmem:[%s722_s19] sm:$0xf] }
 0x15b   : > { %366 = vst [vmem:[%s348_s3] sm:$0xf] %v365_v21 }
 0x15c   : > { %s823_s7 = smov (!%p385_p10, %s389_s7), %s388_s6 }
 0x15d   : > { %s536_s16 = sshll.u32 %s823_s7, 1 }
 0x15e   : > { %s392_s19 = scalar_lea.vmem %s812_s2, %s536_s16 }
 0x15f   : > { %410 = vst [vmem:[%s392_s19] sm:$0x3] %v409_v22 }
 0x160 PF: > { %s9_s13 = sadd.s32 1, %s641_s13   ;;  %s816_s9 = smov %s629_s10 }
 0x161   : > { %p6_p11 = scmp.ge.s32.totalorder %s9_s13, 4   ;;  %s817_s10 = smov %s705_s25 }
 0x162   : > { %s818_s11 = smov %s637_s12  ;;  %s819_s12 = smov %s821_s14 }
 0x163   :  { %8 = sbr.rel (!%p6_p11) target bundleno = 3 (0x3), region = 178 }

</bundles_post_ra>
